<compile_context>
chip_gen: v5e
topology: v5e:2x2
jax: 0.10.0
libtpu: 0.0.40
codegen_flags: <defaults>
</compile_context>

<pallas_src>
import jax
import jax.numpy as jnp
from jax.experimental import pallas as pl
from jax.experimental.pallas import tpu as pltpu


# ----------------------------- Pallas kernel --------------------------------

def _fused_linear_kernel(x_ref, w_ref, b_ref, o_ref):
    # x: (n_ctx, K) bf16 ; w: (K, M) bf16 ; b: (1, M) f32 ; o: (n_ctx, M) f32
    acc = jnp.dot(x_ref[...], w_ref[...], preferred_element_type=jnp.float32)
    o_ref[...] = (acc + b_ref[...]).astype(o_ref.dtype)


def fused_prompt_projections(prompts, w_stack, b_stack):
    """out[l] = prompts[l] @ w_stack[min(l, nw-1)] + b_stack[min(l, nw-1)].

    prompts: (L, n_ctx, K) float32   (cast to bf16 at the kernel boundary)
    w_stack: (nw, K, M)   bfloat16   (nw in {1, 2}; clone weight deduplicated)
    b_stack: (nw, M)      float32
    returns: (L, n_ctx, M) float32
    """
    L, n_ctx, k = prompts.shape
    nw, k2, m = w_stack.shape
    assert k == k2 and b_stack.shape == (nw, m)

    x = prompts.astype(jnp.bfloat16)
    b3 = b_stack.reshape(nw, 1, m)
    w_last = nw - 1  # weight/bias block index for layers >= 1 (clone layer)

    cost = pl.CostEstimate(
        flops=2 * L * n_ctx * k * m,
        transcendentals=0,
        bytes_accessed=(x.size * x.dtype.itemsize
                        + w_stack.size * w_stack.dtype.itemsize
                        + b3.size * b3.dtype.itemsize
                        + L * n_ctx * m * 4),
    )

    return pl.pallas_call(
        _fused_linear_kernel,
        out_shape=jax.ShapeDtypeStruct((L, n_ctx, m), jnp.float32),
        grid_spec=pltpu.PrefetchScalarGridSpec(
            num_scalar_prefetch=0,
            grid=(L,),
            in_specs=[
                # per-layer prompt tile (leading layer dim squeezed away)
                pl.BlockSpec((None, n_ctx, k), lambda l: (l, 0, 0)),
                # weight: block 0 for layer 0 (proj), block nw-1 for all clone layers
                # -> same block index across grid steps 1..L-1, so no re-DMA.
                pl.BlockSpec((None, k, m), lambda l: (jnp.minimum(l, w_last), 0, 0)),
                pl.BlockSpec((None, 1, m), lambda l: (jnp.minimum(l, w_last), 0, 0)),
            ],
            out_specs=pl.BlockSpec((None, n_ctx, m), lambda l: (l, 0, 0)),
        ),
        compiler_params=pltpu.CompilerParams(
            dimension_semantics=("arbitrary",)),
        cost_estimate=cost,
    )(x, w_stack, b3)


# -------------------------- Module (params + fwd) ----------------------------

class MultiModalPromptLearnerJAX:
    """Synthetic, deterministic re-implementation of MaPLe's prompt learner."""

    def __init__(self, *, batch_size, num_context, prompt_depth, ctx_dim=512,
                 key=jax.random.PRNGKey(0)):
        assert prompt_depth >= 1, "For MaPLe, PROMPT_DEPTH should be >= 1"
        # PyTorch applies Linear(ctx_dim, 768) clones to (n_ctx, 512) tensors,
        # which only type-checks when ctx_dim == 512 (CLIP ln_final width).
        assert ctx_dim == 512
        self.n_cls = batch_size
        self.n_ctx = num_context
        self.compound_prompts_depth = prompt_depth
        self.ctx_dim = ctx_dim
        proj_out = 768
        compound_dim = 512

        keys = jax.random.split(key, 5 + max(prompt_depth - 1, 1))
        k_ctx, k_pw, k_pb, k_cw, k_cb = keys[:5]
        k_prompts = keys[5:]

        # ctx ~ Normal(0, 0.02), shape (n_ctx, ctx_dim)
        self.ctx = 0.02 * jax.random.normal(k_ctx, (num_context, ctx_dim),
                                            dtype=jnp.float32)

        # proj: nn.Linear(ctx_dim, 768).half()  (we keep W^T, stored bf16)
        bound = 1.0 / (ctx_dim ** 0.5)
        self.proj_w_t = jax.random.uniform(
            k_pw, (ctx_dim, proj_out), minval=-bound, maxval=bound,
            dtype=jnp.float32).astype(jnp.bfloat16)
        self.proj_b = jax.random.uniform(
            k_pb, (proj_out,), minval=-bound, maxval=bound, dtype=jnp.float32)

        # single_layer = nn.Linear(ctx_dim, 768); clones share identical weights.
        self.clone_w_t = jax.random.uniform(
            k_cw, (ctx_dim, proj_out), minval=-bound, maxval=bound,
            dtype=jnp.float32).astype(jnp.bfloat16)
        self.clone_b = jax.random.uniform(
            k_cb, (proj_out,), minval=-bound, maxval=bound, dtype=jnp.float32)

        # compound_prompts_text: (depth-1) params of shape (n_ctx, 512), Normal(0, 0.02)
        self.compound_prompts_text = [
            0.02 * jax.random.normal(k_prompts[i], (num_context, compound_dim),
                                     dtype=jnp.float32)
            for i in range(prompt_depth - 1)
        ]

        # Pre-stacked, deduplicated weight/bias stacks for the fused kernel.
        if prompt_depth > 1:
            self.w_stack = jnp.stack([self.proj_w_t, self.clone_w_t])   # (2, 512, 768)
            self.b_stack = jnp.stack([self.proj_b, self.clone_b])       # (2, 768)
        else:
            self.w_stack = self.proj_w_t[None]                          # (1, 512, 768)
            self.b_stack = self.proj_b[None]                            # (1, 768)

    def forward(self, num_batch):
        ctx = self.ctx
        # ctx.dim() == 2 -> unsqueeze(0).expand(num_batch, -1, -1)  (pure glue, no compute)
        ctx_expanded = jnp.broadcast_to(ctx[None, :, :], (num_batch,) + ctx.shape)

        # One fused Pallas call: layer 0 = proj(ctx), layers 1.. = compound projections.
        prompts_stack = jnp.stack([self.ctx] + self.compound_prompts_text)  # (depth, n_ctx, 512)
        out = fused_prompt_projections(prompts_stack, self.w_stack, self.b_stack)

        proj_ctx = out[0]
        visual_deep_prompts = [out[1 + i]
                               for i in range(self.compound_prompts_depth - 1)]

        return (ctx_expanded, proj_ctx, self.compound_prompts_text,
                visual_deep_prompts)


# ----------------------------------- main ------------------------------------

if __name__ == "__main__":
    # Small, module-consistent shapes:
    #   batch_size (n_cls) = 2, num_context = 8, prompt_depth = 3, ctx_dim = 512
    learner = MultiModalPromptLearnerJAX(batch_size=2, num_context=8,
                                         prompt_depth=3, ctx_dim=512,
                                         key=jax.random.PRNGKey(0))

    num_batch = 2
    ctx_e, proj_ctx, compound_txt, visual_prompts = learner.forward(num_batch)
    jax.block_until_ready((ctx_e, proj_ctx, compound_txt, visual_prompts))

    # Reference check against plain JAX matmul with the same bf16 input rounding.
    def ref_linear(x_f32, w_bf16, b_f32):
        return (x_f32.astype(jnp.bfloat16).astype(jnp.float32)
                @ w_bf16.astype(jnp.float32) + b_f32)

    assert ctx_e.shape == (num_batch, 8, 512)
    assert proj_ctx.shape == (8, 768)
    assert len(compound_txt) == 2 and compound_txt[0].shape == (8, 512)
    assert len(visual_prompts) == 2 and visual_prompts[0].shape == (8, 768)

    ref_proj = ref_linear(learner.ctx, learner.proj_w_t, learner.proj_b)
    assert jnp.allclose(proj_ctx, ref_proj, atol=2e-3, rtol=2e-3)
    for i in range(2):
        ref_v = ref_linear(learner.compound_prompts_text[i],
                           learner.clone_w_t, learner.clone_b)
        assert jnp.allclose(visual_prompts[i], ref_v, atol=2e-3, rtol=2e-3)

    print("KERNEL_OK")
</pallas_src>

<mosaic_0001>
module attributes {stable_mosaic.version = 11 : i64} {
  func.func @_fused_linear_kernel(%arg0: i32, %arg1: memref<1x8x512xbf16, #tpu.memory_space<vmem>>, %arg2: memref<1x512x768xbf16, #tpu.memory_space<vmem>>, %arg3: memref<1x1x768xf32, #tpu.memory_space<vmem>>, %arg4: memref<1x8x768xf32, #tpu.memory_space<vmem>>) attributes {dimension_semantics = [#tpu.dimension_semantics<arbitrary>], iteration_bounds = array<i64: 3>, scalar_prefetch = 0 : i64, scratch_operands = 0 : i64, tpu.core_type = #tpu.core_type<tc>, window_params = [{transform_indices = @transform_0, window_bounds = array<i64: 1, 8, 512>}, {transform_indices = @transform_1, window_bounds = array<i64: 1, 512, 768>}, {transform_indices = @transform_2, window_bounds = array<i64: 1, 1, 768>}, {transform_indices = @transform_3, window_bounds = array<i64: 1, 8, 768>}]} {
    %c0 = arith.constant 0 : index
    %c0_0 = arith.constant 0 : index
    %c0_1 = arith.constant 0 : index
    %0 = vector.load %arg1[%c0, %c0_0, %c0_1] : memref<1x8x512xbf16, #tpu.memory_space<vmem>>, vector<1x8x512xbf16>
    %1 = vector.shape_cast %0 : vector<1x8x512xbf16> to vector<8x512xbf16>
    %c0_2 = arith.constant 0 : index
    %c0_3 = arith.constant 0 : index
    %c0_4 = arith.constant 0 : index
    %2 = vector.load %arg2[%c0_2, %c0_3, %c0_4] : memref<1x512x768xbf16, #tpu.memory_space<vmem>>, vector<1x512x768xbf16>
    %3 = vector.shape_cast %2 : vector<1x512x768xbf16> to vector<512x768xbf16>
    %cst = arith.constant dense<0.000000e+00> : vector<8x768xf32>
    %4 = tpu.matmul %1, %3, %cst {dimension_numbers = #tpu.dot_dimension_numbers<[1], [0], [0], [1], [0, 0, 1, 1], [], []>} : vector<8x512xbf16>, vector<512x768xbf16>, vector<8x768xf32> -> vector<8x768xf32>
    %c0_5 = arith.constant 0 : index
    %c0_6 = arith.constant 0 : index
    %c0_7 = arith.constant 0 : index
    %5 = vector.load %arg3[%c0_5, %c0_6, %c0_7] : memref<1x1x768xf32, #tpu.memory_space<vmem>>, vector<1x1x768xf32>
    %6 = vector.shape_cast %5 : vector<1x1x768xf32> to vector<1x768xf32>
    %7 = vector.broadcast %6 : vector<1x768xf32> to vector<8x768xf32>
    %8 = arith.addf %4, %7 : vector<8x768xf32>
    %c0_8 = arith.constant 0 : index
    %c0_9 = arith.constant 0 : index
    %c0_10 = arith.constant 0 : index
    %9 = vector.load %arg4[%c0_8, %c0_9, %c0_10] : memref<1x8x768xf32, #tpu.memory_space<vmem>>, vector<1x8x768xf32>
    %10 = vector.shape_cast %9 : vector<1x8x768xf32> to vector<8x768xf32>
    %11 = vector.shape_cast %8 : vector<8x768xf32> to vector<1x8x768xf32>
    tpu.vector_store %arg4[%c0_8, %c0_9, %c0_10], %11 {strides = array<i32>} : memref<1x8x768xf32, #tpu.memory_space<vmem>>, vector<1x8x768xf32>,
    return
  }
  func.func @transform_0(%arg0: i32) -> (i32, i32, i32) {
    %c0_i32 = arith.constant 0 : i32
    %c0_i32_0 = arith.constant 0 : i32
    %c0_i32_1 = arith.constant 0 : i32
    return %arg0, %c0_i32, %c0_i32_0 : i32, i32, i32
  }
  func.func @transform_1(%arg0: i32) -> (i32, i32, i32) {
    %c1_i32 = arith.constant 1 : i32
    %0 = arith.minsi %arg0, %c1_i32 : i32
    %c0_i32 = arith.constant 0 : i32
    %c0_i32_0 = arith.constant 0 : i32
    %c0_i32_1 = arith.constant 0 : i32
    return %0, %c0_i32, %c0_i32_0 : i32, i32, i32
  }
  func.func @transform_2(%arg0: i32) -> (i32, i32, i32) {
    %c1_i32 = arith.constant 1 : i32
    %0 = arith.minsi %arg0, %c1_i32 : i32
    %c0_i32 = arith.constant 0 : i32
    %c0_i32_0 = arith.constant 0 : i32
    %c0_i32_1 = arith.constant 0 : i32
    return %0, %c0_i32, %c0_i32_0 : i32, i32, i32
  }
  func.func @transform_3(%arg0: i32) -> (i32, i32, i32) {
    %c0_i32 = arith.constant 0 : i32
    %c0_i32_0 = arith.constant 0 : i32
    %c0_i32_1 = arith.constant 0 : i32
    return %arg0, %c0_i32, %c0_i32_0 : i32, i32, i32
  }
}

</mosaic_0001>

<bundles_post_ra>
// kernel: tpu_custom_call.1
= control target key start
LH: loop header
LB: loop body
LE: loop exit
PB: predicated region body
PF: predicated region fallthrough
CT: control target
= control target key end

     0   :  { %s3868_s0 = inlined_call_operand.hbm [shape: bf16[3,8,512], index: 0, kind: input, shape index: {}]   ;;  %s3869_s1 = inlined_call_operand.hbm [shape: bf16[2,512,768], index: 1, kind: input, shape index: {}]   ;;  %s3870_s2 = inlined_call_operand.hbm [shape: f32[2,1,768], index: 2, kind: input, shape index: {}]   ;;  %s3871_s3 = inlined_call_operand.hbm [shape: f32[3,8,768], index: 3, kind: output, shape index: {}]  }
   0x1   :  { %3880 = sst [smem:[#allocation19_spill]] %s3869_s1 }
   0x2   :  { %8 = vsyncpa [#allocation3], 0 }
   0x3   :  { %10 = vsyncpa [#allocation3 + $0x1], 0 }
   0x4   :  { %11 = vsyncpa [#allocation6], 0 }
   0x5   :  { %13 = vsyncpa [#allocation6 + $0x1], 0 }
   0x6   :  { %14 = vsyncpa [#allocation4], 0 }
   0x7   :  { %16 = vsyncpa [#allocation4 + $0x1], 0  ;;  %s3184_s12 = smov 0   ;;  %s3186_s13 = smov 0  }
   0x8   :  { %s3188_s14 = smov 0   ;;  %s3190_s15 = smov 0  }
   0x9   :  { %s3192_s16 = smov 0   ;;  %s3194_s17 = smov 0  }
   0xa   :  { %s3196_s18 = smov 0  }
   0xb LB: > { %3881 = sst [smem:[#allocation12_spill]] %s3144_s14  ;;  %s3220_s19 = sadd.s32 1, %s3160_s18   ;;  %s3160_s18 = sphi %s3196_s18, %s3902_s18   ;;  %s3156_s17 = sphi %s3194_s17, %s3906_s17   ;;  %s3152_s16 = sphi %s3192_s16, %s3910_s16   ;;  %s3148_s15 = sphi %s3190_s15, %s3909_s15   ;;  %s3144_s14 = sphi %s3188_s14, %s3904_s14   ;;  %s3140_s13 = sphi %s3186_s13, %s3908_s13   ;;  %s3136_s12 = sphi %s3184_s12, %s3907_s12  }
   0xc   : > { %3882 = sst [smem:[#allocation13_spill]] %s3148_s15  ;;  %p37_p0 = scmp.eq.s32.totalorder %s3160_s18, 0 }
   0xd   : > { %3883 = sst [smem:[#allocation14_spill]] %s3156_s17  ;;  %p52_p1 = scmp.lt.s32.totalorder %s3160_s18, 1 }
   0xe   : > { %3884 = sst [smem:[#allocation15_spill]] %s3220_s19  ;;  %p54_p2 = scmp.lt.s32.totalorder %s3220_s19, 1 }
   0xf   : > { %s59_s20 = sadd.s32 1, %s3144_s14  ;;  %p66_p3 = scmp.ne.s32.totalorder %s3144_s14, %s3140_s13 }
  0x10   : > { %s3229_s21 = scalar_select %p52_p1, %s3160_s18, 1 }
  0x11   : > { %s55_s22 = scalar_select %p54_p2, %s3220_s19, 1 }
  0x12   : > { %p68_p4 = por %p66_p3, %p37_p0  ;;  %p72_p5 = scmp.ne.s32.totalorder %s3140_s13, %s3136_s12 }
  0x13   : > { %s56_s23 = ssub.s32 %s3229_s21, %s55_s22  ;;  %p2916_p7 = scmp.lt.s32.totalorder %s3160_s18, 3 }
  0x14   : > { %p57_p6 = scmp.eq.s32.totalorder %s56_s23, 0  ;;  %s172_s24 = sand.u32 1, %s3160_s18  }
  0x15   : > { %s3873_s25 = sand.u32 1, %s3144_s14   ;;  %s2887_s28 = smul.u32 1536, %s3229_s21 }
  0x16   : > { %s3241_s26 = scalar_select %p57_p6, %s3144_s14, %s59_s20  }
  0x17   : > { %s2886_s27 = smul.u32 1536, %s3873_s25  ;;  %p3248_p8 = pnand %p2916_p7, %p68_p4 }
  0x18   : > { %3885 = sst [smem:[#allocation16_spill]] %s3241_s26  ;;  %p1920_p9 = scmp.ge.s32.totalorder %s3160_s18, 1 }
  0x19   : > { %s3887_s1 = sld [smem:[#allocation19_spill]]  ;;  %s176_s6 = scalar_lea.vmem [#allocation5], %s2886_s27 }
  0x1a   : > { %s186_s7 = sshll.u32 %s176_s6, 4  ;;  %s3256_s9 = scalar_lea.sflag [#allocation6], %s172_s24  ;;  %s187_s7 = int_to_ptr.vmem [resolvable:$true] %s186_s7 }
  0x1b   : > { %p3872_p11 = pneg %p3248_p8 }
  0x1f   : > { %s183_s5 = scalar_lea.hbm %s3887_s1, %s2887_s28  ;;  %s2983_s23 = scalar_lea.hbm %s3887_s1, 3072 }
  0x20   : > { %s184_s8 = sshll.u32 %s183_s5, 4  ;;  %s185_s8 = int_to_ptr.hbm [resolvable:$true] %s184_s8 }
  0x21   : > { %s2976_s10 = sshra.s32 %s185_s8, 4  ;;  %s2977_s10 = int_to_ptr.hbm [resolvable:$true] %s2976_s10 }
  0x22   : > { %s2978_s11 = scalar_lea.hbm %s2977_s10, 1536  ;;  %p2984_p1 = scmp.lt.s32.totalorder %s2977_s10, %s3887_s1 }
  0x23   : > { %p2979_p10 = scmp.ne.s32.totalorder %s2977_s10, %s2978_s11  ;;  %p2985_p2 = scmp.lt.s32.totalorder %s2983_s23, %s2978_s11 }
  0x25   : > { %p2981_p12 = pnand %p3872_p11, %p2979_p10  ;;  %p2986_p3 = por %p2985_p2, %p2984_p1 }
  0x27   : > { %p2982_p13 = pneg %p2981_p12 }
  0x29   : > { %p2987_p4 = pnand %p2986_p3, %p2982_p13 }
  0x2b   : > { %2990 = shalt.err (!%p2987_p4)
}
  0x2c   : > { %s3162_s24 = smov 384   ;;  %s3163_s30 = smov 24  }
  0x2d   : > { %2908 = dma.hbm_to_vmem [thread:$0]  (!%p3248_p8), %s185_s8, 24576, %s187_s7, %s3256_s9, %s3162_s24, %s3162_s24, %s3163_s30  }
  0x2e   : > { %p215_p6 = scmp.lt.s32.totalorder %s3160_s18, 4  ;;  %s3280_s5 = sadd.s32 4294967295, %s3160_s18  }
  0x2f   : > { %s1913_s6 = sadd.s32 4294967294, %s3160_s18   ;;  %s26_s10 = ssub.s32 %s3160_s18, %s3220_s19 }
  0x30   : > { %p3275_p10 = pnand %p1920_p9, %p215_p6  ;;  %s29_s11 = sadd.s32 1, %s3156_s17 }
  0x31   : > { %p27_p12 = scmp.eq.s32.totalorder %s26_s10, 0  ;;  %p36_p13 = scmp.ne.s32.totalorder %s3156_s17, %s3152_s16 }
  0x32   : > { %p42_p1 = scmp.ne.s32.totalorder %s3152_s16, %s3148_s15  ;;  %p43_p2 = scmp.eq.s32.totalorder %s3280_s5, 0 }
  0x33   : > { %s3292_s7 = scalar_select %p27_p12, %s3156_s17, %s29_s11  }
  0x34   : > { %p3296_p3 = por %p37_p0, %p36_p13  ;;  %p3300_p9 = por %p43_p2, %p42_p1 }
  0x35   : > { %3889 = sst [smem:[#allocation17_spill]] %s3292_s7  ;;  %p3307_p4 = por %p72_p5, %p43_p2 }
  0x36   : > { %p126_p6 = scmp.eq.s32.totalorder %s3280_s5, 2  ;;  %p132_p12 = scmp.eq.s32.totalorder %s1913_s6, 2 }
  0x37   : > { %s152_s23 = sand.u32 1, %s3156_s17   ;;  %s2693_s30 = sshll.u32 %s3160_s18, 4 }
  0x38   : > { %p3313_p0 = por %p126_p6, %p36_p13  ;;  %p3317_p11 = por %p132_p12, %p42_p1 }
  0x39   : > { %s1916_s24 = sshll.u32 %s152_s23, 4  ;;  %s161_s11 = scalar_lea.hbm %s3868_s0, %s2693_s30 }
  0x3a   : > { %s3894_s28 = scalar_select %p3317_p11, 1, 0 }
  0x3b   : > { %s156_s25 = scalar_lea.vmem [#allocation2], %s1916_s24  ;;  %s163_s7 = sshll.u32 %s161_s11, 4  ;;  %s164_s7 = int_to_ptr.hbm [resolvable:$true] %s163_s7 }
  0x3c   : > { %3895 = sst [smem:[#allocation18_spill]] %s3894_s28  ;;  %s165_s1 = sshll.u32 %s156_s25, 4  ;;  %s166_s1 = int_to_ptr.vmem [resolvable:$true] %s165_s1 }
  0x3d   : > { %p3329_p5 = pnand %p2916_p7, %p3296_p3  ;;  %s3897_s17 = sand.u32 1, %s3144_s14  }
  0x3e   : > { %s2888_s26 = smul.u32 6, %s3897_s17  ;;  %s153_s28 = scalar_lea.sflag [#allocation3], %s152_s23 }
  0x3f   : > { %s2889_s19 = smul.u32 6, %s3229_s21  ;;  %s3006_s15 = sshra.s32 %s164_s7, 4  ;;  %s3007_s15 = int_to_ptr.hbm [resolvable:$true] %s3006_s15 }
  0x40   : > { %s3008_s12 = scalar_lea.hbm %s3007_s15, 16  ;;  %p3010_p1 = pneg %p3329_p5 }
  0x41   : > { %p3009_p13 = scmp.ne.s32.totalorder %s3007_s15, %s3008_s12  ;;  %s3013_s24 = scalar_lea.hbm %s3868_s0, 48 }
  0x42   : > { %p3014_p7 = scmp.lt.s32.totalorder %s3007_s15, %s3868_s0  ;;  %p3015_p3 = scmp.lt.s32.totalorder %s3013_s24, %s3008_s12 }
  0x43   : > { %p3011_p2 = pnand %p3010_p1, %p3009_p13 }
  0x44   : > { %p3016_p12 = por %p3015_p3, %p3014_p7 }
  0x45   : > { %p3012_p6 = pneg %p3011_p2 }
  0x47   : > { %p3017_p11 = pnand %p3016_p12, %p3012_p6 }
  0x49   : > { %3020 = shalt.err (!%p3017_p11)
}
  0x4a   : > { %2905 = dma.hbm_to_vmem [thread:$0]  (!%p3329_p5), %s164_s7, 256, %s166_s1, %s153_s28  }
  0x4b   : > { %s206_s23 = scalar_lea.hbm %s3870_s2, %s2889_s19  ;;  %s200_s14 = scalar_lea.vmem [#allocation7], %s2888_s26 }
  0x4c   : > { %s208_s11 = sshll.u32 %s206_s23, 4  ;;  %s210_s25 = sshll.u32 %s200_s14, 4  ;;  %s209_s11 = int_to_ptr.hbm [resolvable:$true] %s208_s11  ;;  %s211_s25 = int_to_ptr.vmem [resolvable:$true] %s210_s25 }
  0x4d   : > { %s3036_s8 = sshra.s32 %s209_s11, 4  ;;  %p3898_p1 = pneg %p3248_p8  ;;  %s3037_s8 = int_to_ptr.hbm [resolvable:$true] %s3036_s8 }
  0x4e   : > { %s3038_s15 = scalar_lea.hbm %s3037_s8, 6  ;;  %s3043_s1 = scalar_lea.hbm %s3870_s2, 12 }
  0x4f   : > { %p3039_p13 = scmp.ne.s32.totalorder %s3037_s8, %s3038_s15  ;;  %p3044_p5 = scmp.lt.s32.totalorder %s3037_s8, %s3870_s2 }
  0x50   : > { %p3045_p6 = scmp.lt.s32.totalorder %s3043_s1, %s3038_s15 }
  0x51   : > { %p3041_p11 = pnand %p3039_p13, %p3898_p1 }
  0x52   : > { %p3046_p7 = por %p3045_p6, %p3044_p5 }
  0x53   : > { %p3042_p2 = pneg %p3041_p11 }
  0x55   : > { %p3047_p3 = pnand %p3046_p7, %p3042_p2 }
  0x57   : > { %3050 = shalt.err (!%p3047_p3)
}
  0x58   : > { %2911 = dma.hbm_to_vmem [thread:$0]  (!%p3248_p8), %s209_s11, 96, %s211_s25, %s3256_s9  }
  0x59   : > { %219 = sbr.rel (%p3275_p10) target bundleno = 437 (0x1b5), region = 32  ;;  %s3364_s14 = sand.u32 (!%p3275_p10), 1, %s3152_s16  }
  0x5a   : > { %s1921_s19 = sshll.u32 (!%p3275_p10), %s3364_s14, 4  ;;  %s222_s26 = scalar_lea.sflag (!%p3275_p10), [#allocation3], %s3364_s14 }
  0x5b   : > { %s3368_s24 = scalar_lea.vmem (!%p3275_p10), [#allocation2], %s1921_s19 }
  0x5e   : > { %3123 = dma.done.wait (%p3300_p9), %s222_s26, 256  }
  0x5f   : > { %3125 = vsyncadd (%p3300_p9), %s222_s26, 4294967040  ;;  %s231_s29 = sand.u32 1, %s3280_s5   ;;  %s233_s9 = sand.u32 1, %s3140_s13  }
  0x60   : > { %s2890_s4 = smul.u32 1536, %s233_s9  ;;  %s232_s30 = scalar_lea.sflag [#allocation6], %s231_s29 }
  0x62   : > { %s3378_s10 = scalar_lea.vmem [#allocation5], %s2890_s4 }
  0x63   : > { %3127 = dma.done.wait (%p3307_p4), %s232_s30, 24672  }
  0x64   : > { %3129 = vsyncadd (%p3307_p4), %s232_s30, 4294942624  ;;  %v2092_v0 = vld [vmem:[%s3378_s10 + $0x150] sm:$0xf]  ;;  %v2739_v1 = vld [vmem:[%s3378_s10 + $0x164] sm:$0xf0]  ;;  %s3760_s20 = smul.u32 6, %s233_s9 }
  0x65   : > { %v2284_v2 = vld [vmem:[%s3378_s10 + $0x2d0] sm:$0xf]  ;;  %v2093_v3 = vor.u32 %v2739_v1, %v2092_v0  ;;  %v2787_v4 = vld [vmem:[%s3378_s10 + $0x2e4] sm:$0xf0]  ;;  %v2068_v11 = vld [vmem:[%s3378_s10 + $0x120] sm:$0xf] }
  0x66   : > { %v2476_v5 = vld [vmem:[%s3378_s10 + $0x450] sm:$0xf]  ;;  %v2835_v6 = vld [vmem:[%s3378_s10 + $0x464] sm:$0xf0]  ;;  %v2285_v7 = vor.u32 %v2787_v4, %v2284_v2  ;;  %v2733_v13 = vld [vmem:[%s3378_s10 + $0x134] sm:$0xf0] }
  0x67   : > { %v2477_v8 = vor.u32 %v2835_v6, %v2476_v5  ;;  %v2668_v9 = vld [vmem:[%s3378_s10 + $0x5d0] sm:$0xf]  ;;  %v2883_v10 = vld [vmem:[%s3378_s10 + $0x5e4] sm:$0xf0]  ;;  %1465 = vmatpush.bf16.msra.mxu0 %v2093_v3  ;;  %v2260_v14 = vld [vmem:[%s3378_s10 + $0x2a0] sm:$0xf]  ;;  %v2069_v16 = vor.u32 %v2733_v13, %v2068_v11 }
  0x68   : > { %v2669_v12 = vor.u32 %v2883_v10, %v2668_v9  ;;  %v2781_v15 = vld [vmem:[%s3378_s10 + $0x2b4] sm:$0xf0]  ;;  %1478 = vmatpush.bf16.msra.mxu1 %v2285_v7  ;;  %v2452_v18 = vld [vmem:[%s3378_s10 + $0x420] sm:$0xf]  ;;  %v2044_v23 = vld [vmem:[%s3378_s10 + $0xf0] sm:$0xf] }
  0x69   : > { %1491 = vmatpush.bf16.msra.mxu2 %v2477_v8  ;;  %v2261_v17 = vor.u32 %v2781_v15, %v2260_v14  ;;  %v2829_v19 = vld [vmem:[%s3378_s10 + $0x434] sm:$0xf0]  ;;  %v2644_v20 = vld [vmem:[%s3378_s10 + $0x5a0] sm:$0xf]  ;;  %v2727_v24 = vld [vmem:[%s3378_s10 + $0x104] sm:$0xf0] }
  0x6a   : > { %1504 = vmatpush.bf16.msra.mxu3 %v2669_v12  ;;  %v2453_v21 = vor.u32 %v2829_v19, %v2452_v18  ;;  %v2877_v22 = vld [vmem:[%s3378_s10 + $0x5b4] sm:$0xf0]  ;;  %v2236_v26 = vld [vmem:[%s3378_s10 + $0x270] sm:$0xf]  ;;  %v2775_v27 = vld [vmem:[%s3378_s10 + $0x284] sm:$0xf0]  ;;  %v2045_v29 = vor.u32 %v2727_v24, %v2044_v23 }
  0x6b   : > { %v2645_v25 = vor.u32 %v2877_v22, %v2644_v20  ;;  %v2428_v28 = vld [vmem:[%s3378_s10 + $0x3f0] sm:$0xf]  ;;  %1466 = vmatpush.bf16.msra.mxu0 %v2069_v16  ;;  %v2823_v30 = vld [vmem:[%s3378_s10 + $0x404] sm:$0xf0]  ;;  %v2237_v33 = vor.u32 %v2775_v27, %v2236_v26  ;;  %v2020_v35 = vld [vmem:[%s3378_s10 + $0xc0] sm:$0xf] }
  0x6c   : > { %v2620_v31 = vld [vmem:[%s3378_s10 + $0x570] sm:$0xf]  ;;  %v2871_v32 = vld [vmem:[%s3378_s10 + $0x584] sm:$0xf0]  ;;  %1479 = vmatpush.bf16.msra.mxu1 %v2261_v17  ;;  %v2429_v34 = vor.u32 %v2823_v30, %v2428_v28  ;;  %v2721_v36 = vld [vmem:[%s3378_s10 + $0xd4] sm:$0xf0] }
  0x6d   : > { %1492 = vmatpush.bf16.msra.mxu2 %v2453_v21  ;;  %v2212_v37 = vld [vmem:[%s3378_s10 + $0x240] sm:$0xf]  ;;  %v2621_v38 = vor.u32 %v2871_v32, %v2620_v31  ;;  %v2769_v39 = vld [vmem:[%s3378_s10 + $0x254] sm:$0xf0]  ;;  %v2021_v44 = vor.u32 %v2721_v36, %v2020_v35  ;;  %v1996_v47 = vld [vmem:[%s3378_s10 + $0x90] sm:$0xf] }
  0x6e   : > { %1505 = vmatpush.bf16.msra.mxu3 %v2645_v25  ;;  %v2404_v40 = vld [vmem:[%s3378_s10 + $0x3c0] sm:$0xf]  ;;  %v2817_v41 = vld [vmem:[%s3378_s10 + $0x3d4] sm:$0xf0]  ;;  %v2213_v45 = vor.u32 %v2769_v39, %v2212_v37  ;;  %v2715_v48 = vld [vmem:[%s3378_s10 + $0xa4] sm:$0xf0] }
  0x6f   : > { %v2596_v42 = vld [vmem:[%s3378_s10 + $0x540] sm:$0xf]  ;;  %v2865_v43 = vld [vmem:[%s3378_s10 + $0x554] sm:$0xf0]  ;;  %1467 = vmatpush.bf16.msra.mxu0 %v2045_v29  ;;  %v2405_v46 = vor.u32 %v2817_v41, %v2404_v40  ;;  %v2188_v49 = vld [vmem:[%s3378_s10 + $0x210] sm:$0xf]  ;;  %v1997_v56 = vor.u32 %v2715_v48, %v1996_v47 }
  0x70   : > { %1480 = vmatpush.bf16.msra.mxu1 %v2237_v33  ;;  %v2597_v50 = vor.u32 %v2865_v43, %v2596_v42  ;;  %v2763_v51 = vld [vmem:[%s3378_s10 + $0x224] sm:$0xf0]  ;;  %v2380_v52 = vld [vmem:[%s3378_s10 + $0x390] sm:$0xf]  ;;  %v1972_v59 = vld [vmem:[%s3378_s10 + $0x60] sm:$0xf] }
  0x71   : > { %1493 = vmatpush.bf16.msra.mxu2 %v2429_v34  ;;  %v2811_v53 = vld [vmem:[%s3378_s10 + $0x3a4] sm:$0xf0]  ;;  %v2572_v54 = vld [vmem:[%s3378_s10 + $0x510] sm:$0xf]  ;;  %v2189_v57 = vor.u32 %v2763_v51, %v2188_v49  ;;  %v2709_v60 = vld [vmem:[%s3378_s10 + $0x74] sm:$0xf0] }
  0x72   : > { %1506 = vmatpush.bf16.msra.mxu3 %v2621_v38  ;;  %v2859_v55 = vld [vmem:[%s3378_s10 + $0x524] sm:$0xf0]  ;;  %v2381_v58 = vor.u32 %v2811_v53, %v2380_v52  ;;  %v2164_v61 = vld [vmem:[%s3378_s10 + $0x1e0] sm:$0xf]  ;;  %v2757_v63 = vld [vmem:[%s3378_s10 + $0x1f4] sm:$0xf0]  ;;  %v1973_v4 = vor.u32 %v2709_v60, %v1972_v59 }
  0x73   : > { %1468 = vmatpush.bf16.msra.mxu0 %v2021_v44  ;;  %v2573_v62 = vor.u32 %v2859_v55, %v2572_v54  ;;  %v2356_v0 = vld [vmem:[%s3378_s10 + $0x360] sm:$0xf]  ;;  %v2805_v1 = vld [vmem:[%s3378_s10 + $0x374] sm:$0xf0]  ;;  %v2165_v5 = vor.u32 %v2757_v63, %v2164_v61  ;;  %v1948_v7 = vld [vmem:[%s3378_s10 + $0x30] sm:$0xf] }
  0x74   : > { %1481 = vmatpush.bf16.msra.mxu1 %v2213_v45  ;;  %v2548_v2 = vld [vmem:[%s3378_s10 + $0x4e0] sm:$0xf]  ;;  %v2853_v3 = vld [vmem:[%s3378_s10 + $0x4f4] sm:$0xf0]  ;;  %v2357_v6 = vor.u32 %v2805_v1, %v2356_v0  ;;  %v2703_v8 = vld [vmem:[%s3378_s10 + $0x44] sm:$0xf0] }
  0x75   : > { %1494 = vmatpush.bf16.msra.mxu2 %v2405_v46  ;;  %v2140_v9 = vld [vmem:[%s3378_s10 + $0x1b0] sm:$0xf]  ;;  %v2549_v10 = vor.u32 %v2853_v3, %v2548_v2  ;;  %v2751_v11 = vld [vmem:[%s3378_s10 + $0x1c4] sm:$0xf0]  ;;  %v1949_v16 = vor.u32 %v2703_v8, %v1948_v7  ;;  %v1924_v17 = vld [vmem:[%s3378_s10] sm:$0xf] }
  0x76   : > { %1507 = vmatpush.bf16.msra.mxu3 %v2597_v50  ;;  %v2332_v12 = vld [vmem:[%s3378_s10 + $0x330] sm:$0xf]  ;;  %v2799_v13 = vld [vmem:[%s3378_s10 + $0x344] sm:$0xf0]  ;;  %v2697_v18 = vld [vmem:[%s3378_s10 + $0x14] sm:$0xf0]  ;;  %v2141_v19 = vor.u32 %v2751_v11, %v2140_v9 }
  0x77   : > { %1469 = vmatpush.bf16.msra.mxu0 %v1997_v56  ;;  %v2524_v14 = vld [vmem:[%s3378_s10 + $0x4b0] sm:$0xf]  ;;  %v2847_v15 = vld [vmem:[%s3378_s10 + $0x4c4] sm:$0xf0]  ;;  %v2333_v20 = vor.u32 %v2799_v13, %v2332_v12  ;;  %v2116_v21 = vld [vmem:[%s3378_s10 + $0x180] sm:$0xf]  ;;  %v1925_v31 = vor.u32 %v2697_v18, %v1924_v17 }
  0x78   : > { %1482 = vmatpush.bf16.msra.mxu1 %v2189_v57  ;;  %v2745_v22 = vld [vmem:[%s3378_s10 + $0x194] sm:$0xf0]  ;;  %v2308_v23 = vld [vmem:[%s3378_s10 + $0x300] sm:$0xf]  ;;  %v2525_v24 = vor.u32 %v2847_v15, %v2524_v14  ;;  %v2736_v28 = vld [vmem:[%s3378_s10 + $0x154] sm:$0xf] }
  0x79   : > { %1495 = vmatpush.bf16.msra.mxu2 %v2381_v58  ;;  %v2793_v25 = vld [vmem:[%s3378_s10 + $0x314] sm:$0xf0]  ;;  %v2500_v26 = vld [vmem:[%s3378_s10 + $0x480] sm:$0xf]  ;;  %v2094_v29 = vld [vmem:[%s3378_s10 + $0x168] sm:$0xf0]  ;;  %v2117_v35 = vor.u32 %v2745_v22, %v2116_v21 }
  0x7a   : > { %1508 = vmatpush.bf16.msra.mxu3 %v2573_v62  ;;  %v2841_v27 = vld [vmem:[%s3378_s10 + $0x494] sm:$0xf0]  ;;  %v2784_v30 = vld [vmem:[%s3378_s10 + $0x2d4] sm:$0xf]  ;;  %v2286_v32 = vld [vmem:[%s3378_s10 + $0x2e8] sm:$0xf0]  ;;  %v2309_v36 = vor.u32 %v2793_v25, %v2308_v23  ;;  %v2097_v40 = vor.u32 %v2736_v28, %v2094_v29 }
  0x7b   : > { %1470 = vmatpush.bf16.msra.mxu0 %v1973_v4  ;;  %v2832_v33 = vld [vmem:[%s3378_s10 + $0x454] sm:$0xf]  ;;  %v2478_v34 = vld [vmem:[%s3378_s10 + $0x468] sm:$0xf0]  ;;  %v2501_v39 = vor.u32 %v2841_v27, %v2500_v26  ;;  %v2289_v41 = vor.u32 %v2784_v30, %v2286_v32  ;;  %v2730_v43 = vld [vmem:[%s3378_s10 + $0x124] sm:$0xf] }
  0x7c   : > { %1483 = vmatpush.bf16.msra.mxu1 %v2165_v5  ;;  %v2880_v37 = vld [vmem:[%s3378_s10 + $0x5d4] sm:$0xf]  ;;  %v2670_v38 = vld [vmem:[%s3378_s10 + $0x5e8] sm:$0xf0]  ;;  %v2481_v42 = vor.u32 %v2832_v33, %v2478_v34  ;;  %v2070_v44 = vld [vmem:[%s3378_s10 + $0x138] sm:$0xf0] }
  0x7d   : > { %1496 = vmatpush.bf16.msra.mxu2 %v2357_v6  ;;  %v2778_v45 = vld [vmem:[%s3378_s10 + $0x2a4] sm:$0xf]  ;;  %v2673_v46 = vor.u32 %v2880_v37, %v2670_v38  ;;  %v2262_v47 = vld [vmem:[%s3378_s10 + $0x2b8] sm:$0xf0]  ;;  %v2073_v52 = vor.u32 %v2730_v43, %v2070_v44  ;;  %v2724_v55 = vld [vmem:[%s3378_s10 + $0xf4] sm:$0xf] }
  0x7e   : > { %1509 = vmatpush.bf16.msra.mxu3 %v2549_v10  ;;  %v2826_v48 = vld [vmem:[%s3378_s10 + $0x424] sm:$0xf]  ;;  %v2454_v49 = vld [vmem:[%s3378_s10 + $0x438] sm:$0xf0]  ;;  %v2265_v53 = vor.u32 %v2778_v45, %v2262_v47  ;;  %v2046_v56 = vld [vmem:[%s3378_s10 + $0x108] sm:$0xf0] }
  0x7f   : > { %1471 = vmatpush.bf16.msra.mxu0 %v1949_v16  ;;  %v2874_v50 = vld [vmem:[%s3378_s10 + $0x5a4] sm:$0xf]  ;;  %v2646_v51 = vld [vmem:[%s3378_s10 + $0x5b8] sm:$0xf0]  ;;  %v2457_v54 = vor.u32 %v2826_v48, %v2454_v49  ;;  %v2772_v57 = vld [vmem:[%s3378_s10 + $0x274] sm:$0xf]  ;;  %v2049_v0 = vor.u32 %v2724_v55, %v2046_v56 }
  0x80   : > { %1484 = vmatpush.bf16.msra.mxu1 %v2141_v19  ;;  %v2649_v58 = vor.u32 %v2874_v50, %v2646_v51  ;;  %v2238_v59 = vld [vmem:[%s3378_s10 + $0x288] sm:$0xf0]  ;;  %v2820_v60 = vld [vmem:[%s3378_s10 + $0x3f4] sm:$0xf]  ;;  %v2718_v4 = vld [vmem:[%s3378_s10 + $0xc4] sm:$0xf] }
  0x81   : > { %1497 = vmatpush.bf16.msra.mxu2 %v2333_v20  ;;  %v2430_v61 = vld [vmem:[%s3378_s10 + $0x408] sm:$0xf0]  ;;  %v2868_v62 = vld [vmem:[%s3378_s10 + $0x574] sm:$0xf]  ;;  %v2241_v2 = vor.u32 %v2772_v57, %v2238_v59  ;;  %v2022_v5 = vld [vmem:[%s3378_s10 + $0xd8] sm:$0xf0] }
  0x82   : > { %1510 = vmatpush.bf16.msra.mxu3 %v2525_v24  ;;  %v2622_v63 = vld [vmem:[%s3378_s10 + $0x588] sm:$0xf0]  ;;  %v2433_v3 = vor.u32 %v2820_v60, %v2430_v61  ;;  %v2766_v6 = vld [vmem:[%s3378_s10 + $0x244] sm:$0xf]  ;;  %v2214_v10 = vld [vmem:[%s3378_s10 + $0x258] sm:$0xf0]  ;;  %v2025_v18 = vor.u32 %v2718_v4, %v2022_v5 }
  0x83   : > { %1472 = vmatpush.bf16.msra.mxu0 %v1925_v31  ;;  %v284_v1 = vld [vmem:[%s3368_s24 + $0x8] sm:$0xff]  ;;  %v2625_v9 = vor.u32 %v2868_v62, %v2622_v63  ;;  %v2814_v11 = vld [vmem:[%s3378_s10 + $0x3c4] sm:$0xf]  ;;  %v2217_v21 = vor.u32 %v2766_v6, %v2214_v10  ;;  %v2712_v23 = vld [vmem:[%s3378_s10 + $0x94] sm:$0xf]  ;;  %s245_s22 = scalar_lea.vmem [#allocation7], %s3760_s20 }
  0x84   : > { %1485 = vmatpush.bf16.msra.mxu1 %v2117_v35  ;;  %v495_v7 = vunpack.c.l.b16 %v284_v1  ;;  %v496_v8 = vunpack.c.h.b16 %v284_v1  ;;  %v2406_v12 = vld [vmem:[%s3378_s10 + $0x3d8] sm:$0xf0]  ;;  %v2862_v13 = vld [vmem:[%s3378_s10 + $0x544] sm:$0xf]  ;;  %v1998_v24 = vld [vmem:[%s3378_s10 + $0xa8] sm:$0xf0] }
  0x85   : > { %1498 = vmatpush.bf16.msra.mxu2 %v2309_v36  ;;  %v2598_v14 = vld [vmem:[%s3378_s10 + $0x558] sm:$0xf0]  ;;  %v283_v17 = vld [vmem:[%s3368_s24] sm:$0xff]  ;;  %v2409_v22 = vor.u32 %v2814_v11, %v2406_v12  ;;  %v2190_v27 = vld [vmem:[%s3378_s10 + $0x228] sm:$0xf0]  ;;  %v2001_v34 = vor.u32 %v2712_v23, %v1998_v24  ;;  %s2892_s17 = smul.u32 48, %s3364_s14 }
  0x86   : > { %1511 = vmatpush.bf16.msra.mxu3 %v2501_v39  ;;  %v3481_v15 = vpack.c.b16 %v495_v7, %v495_v7  ;;  %v3483_v16 = vpack.c.b16 %v496_v8, %v496_v8  ;;  %v493_v19 = vunpack.c.l.b16 %v283_v17  ;;  %v494_v20 = vunpack.c.h.b16 %v283_v17  ;;  %v2760_v25 = vld [vmem:[%s3378_s10 + $0x214] sm:$0xf]  ;;  %v2382_v29 = vld [vmem:[%s3378_s10 + $0x3a8] sm:$0xf0]  ;;  %v2706_v37 = vld [vmem:[%s3378_s10 + $0x64] sm:$0xf] }
  0x87   : > { %1517 = vmatpush.bf16.msrb.mxu0 %v2097_v40  ;;  %v2601_v26 = vor.u32 %v2862_v13, %v2598_v14  ;;  %v2808_v28 = vld [vmem:[%s3378_s10 + $0x394] sm:$0xf]  ;;  %v2574_v33 = vld [vmem:[%s3378_s10 + $0x528] sm:$0xf0]  ;;  %v2193_v35 = vor.u32 %v2760_v25, %v2190_v27  ;;  %v1974_v38 = vld [vmem:[%s3378_s10 + $0x78] sm:$0xf0] }
  0x88   : > { %1530 = vmatpush.bf16.msrb.mxu1 %v2289_v41  ;;  %1499 = vmatmul.bf16.vlgmr.msra.gmra.mxu2 %v3481_v15  ;;  %v3493_v30 = vpack.c.b16 %v493_v19, %v493_v19  ;;  %v3495_v31 = vpack.c.b16 %v494_v20, %v494_v20  ;;  %v2856_v32 = vld [vmem:[%s3378_s10 + $0x514] sm:$0xf]  ;;  %v2385_v36 = vor.u32 %v2808_v28, %v2382_v29  ;;  %v2754_v39 = vld [vmem:[%s3378_s10 + $0x1e4] sm:$0xf]  ;;  %v2166_v41 = vld [vmem:[%s3378_s10 + $0x1f8] sm:$0xf0] }
  0x89   : > { %1543 = vmatpush.bf16.msrb.mxu2 %v2481_v42  ;;  %1512 = vmatmul.bf16.vlgmr.msra.gmra.mxu3 %v3483_v16  ;;  %v2577_v40 = vor.u32 %v2856_v32, %v2574_v33  ;;  %v2802_v42 = vld [vmem:[%s3378_s10 + $0x364] sm:$0xf]  ;;  %v2358_v43 = vld [vmem:[%s3378_s10 + $0x378] sm:$0xf0]  ;;  %v2169_v47 = vor.u32 %v2754_v39, %v2166_v41  ;;  %v2700_v49 = vld [vmem:[%s3378_s10 + $0x34] sm:$0xf] }
  0x8a   : > { %1556 = vmatpush.bf16.msrb.mxu3 %v2673_v46  ;;  %1486 = vmatmul.bf16.vlgmr.msra.gmra.mxu1 %v3495_v31  ;;  %v2850_v44 = vld [vmem:[%s3378_s10 + $0x4e4] sm:$0xf]  ;;  %v2550_v45 = vld [vmem:[%s3378_s10 + $0x4f8] sm:$0xf0]  ;;  %v1977_v46 = vor.u32 %v2706_v37, %v1974_v38  ;;  %v2361_v48 = vor.u32 %v2802_v42, %v2358_v43  ;;  %v1950_v50 = vld [vmem:[%s3378_s10 + $0x48] sm:$0xf0] }
  0x8b   : > { %1518 = vmatpush.bf16.msrb.mxu0 %v2073_v52  ;;  %v2748_v51 = vld [vmem:[%s3378_s10 + $0x1b4] sm:$0xf]  ;;  %v2553_v52 = vor.u32 %v2850_v44, %v2550_v45  ;;  %v2334_v55 = vld [vmem:[%s3378_s10 + $0x348] sm:$0xf0]  ;;  %v2694_v59 = vld [vmem:[%s3378_s10 + $0x4] sm:$0xf] }
  0x8c   : > { %1531 = vmatpush.bf16.msrb.mxu1 %v2265_v53  ;;  %1473 = vmatmul.bf16.vlgmr.msra.gmra.mxu0 %v3493_v30  ;;  %v2142_v53 = vld [vmem:[%s3378_s10 + $0x1c8] sm:$0xf0]  ;;  %v2844_v56 = vld [vmem:[%s3378_s10 + $0x4b4] sm:$0xf]  ;;  %v1926_v60 = vld [vmem:[%s3378_s10 + $0x18] sm:$0xf0] }
  0x8d   : > { %1544 = vmatpush.bf16.msrb.mxu2 %v2457_v54  ;;  %v2796_v54 = vld [vmem:[%s3378_s10 + $0x334] sm:$0xf]  ;;  %v2526_v57 = vld [vmem:[%s3378_s10 + $0x4c8] sm:$0xf0]  ;;  %v2145_v61 = vor.u32 %v2748_v51, %v2142_v53  ;;  %v2742_v63 = vld [vmem:[%s3378_s10 + $0x184] sm:$0xf] }
  0x8e   : > { %1557 = vmatpush.bf16.msrb.mxu3 %v2649_v58  ;;  %v1953_v58 = vor.u32 %v2700_v49, %v1950_v50  ;;  %v2337_v62 = vor.u32 %v2796_v54, %v2334_v55  ;;  %v2790_v1 = vld [vmem:[%s3378_s10 + $0x304] sm:$0xf]  ;;  %v2502_v5 = vld [vmem:[%s3378_s10 + $0x498] sm:$0xf0]  ;;  %v2100_v6 = vld [vmem:[%s3378_s10 + $0x158] sm:$0xf] }
  0x8f   : > { %1519 = vmatpush.bf16.msrb.mxu0 %v2049_v0  ;;  %v2118_v0 = vld [vmem:[%s3378_s10 + $0x198] sm:$0xf0]  ;;  %v2838_v4 = vld [vmem:[%s3378_s10 + $0x484] sm:$0xf]  ;;  %v2740_v7 = vld [vmem:[%s3378_s10 + $0x16c] sm:$0xf0] }
  0x90   : > { %1532 = vmatpush.bf16.msrb.mxu1 %v2241_v2  ;;  %v2529_v2 = vor.u32 %v2844_v56, %v2526_v57  ;;  %v2292_v8 = vld [vmem:[%s3378_s10 + $0x2d8] sm:$0xf]  ;;  %v2788_v10 = vld [vmem:[%s3378_s10 + $0x2ec] sm:$0xf0]  ;;  %v2121_v13 = vor.u32 %v2742_v63, %v2118_v0  ;;  %v2505_v19 = vor.u32 %v2838_v4, %v2502_v5  ;;  %v2101_v20 = vor.u32 %v2740_v7, %v2100_v6  ;;  %v2076_v23 = vld [vmem:[%s3378_s10 + $0x128] sm:$0xf] }
  0x91   : > { %1545 = vmatpush.bf16.msrb.mxu2 %v2433_v3  ;;  %v2310_v3 = vld [vmem:[%s3378_s10 + $0x318] sm:$0xf0]  ;;  %v2484_v11 = vld [vmem:[%s3378_s10 + $0x458] sm:$0xf]  ;;  %v2836_v12 = vld [vmem:[%s3378_s10 + $0x46c] sm:$0xf0] }
  0x92   : > { %1558 = vmatpush.bf16.msrb.mxu3 %v2625_v9  ;;  %v1929_v9 = vor.u32 %v2694_v59, %v1926_v60  ;;  %v2313_v14 = vor.u32 %v2790_v1, %v2310_v3  ;;  %v2676_v17 = vld [vmem:[%s3378_s10 + $0x5d8] sm:$0xf]  ;;  %v2734_v24 = vld [vmem:[%s3378_s10 + $0x13c] sm:$0xf0]  ;;  %v2268_v25 = vld [vmem:[%s3378_s10 + $0x2a8] sm:$0xf] }
  0x93   : > { %1520 = vmatpush.bf16.msrb.mxu0 %v2025_v18  ;;  %v2884_v18 = vld [vmem:[%s3378_s10 + $0x5ec] sm:$0xf0]  ;;  %v2782_v27 = vld [vmem:[%s3378_s10 + $0x2bc] sm:$0xf0]  ;;  %v2460_v28 = vld [vmem:[%s3378_s10 + $0x428] sm:$0xf] }
  0x94   : > { %1533 = vmatpush.bf16.msrb.mxu1 %v2217_v21  ;;  %v2293_v21 = vor.u32 %v2788_v10, %v2292_v8  ;;  %v2830_v29 = vld [vmem:[%s3378_s10 + $0x43c] sm:$0xf0]  ;;  %v2652_v32 = vld [vmem:[%s3378_s10 + $0x5a8] sm:$0xf]  ;;  %v2052_v37 = vld [vmem:[%s3378_s10 + $0xf8] sm:$0xf] }
  0x95   : > { %1546 = vmatpush.bf16.msrb.mxu2 %v2409_v22  ;;  %v2485_v22 = vor.u32 %v2836_v12, %v2484_v11  ;;  %v2878_v33 = vld [vmem:[%s3378_s10 + $0x5bc] sm:$0xf0]  ;;  %v2728_v38 = vld [vmem:[%s3378_s10 + $0x10c] sm:$0xf0]  ;;  %v2244_v39 = vld [vmem:[%s3378_s10 + $0x278] sm:$0xf] }
  0x96   : > { %1559 = vmatpush.bf16.msrb.mxu3 %v2601_v26  ;;  %v2677_v26 = vor.u32 %v2884_v18, %v2676_v17  ;;  %v2776_v41 = vld [vmem:[%s3378_s10 + $0x28c] sm:$0xf0]  ;;  %v2436_v42 = vld [vmem:[%s3378_s10 + $0x3f8] sm:$0xf]  ;;  %v2028_v49 = vld [vmem:[%s3378_s10 + $0xc8] sm:$0xf] }
  0x97   : > { %1521 = vmatpush.bf16.msrb.mxu0 %v2001_v34  ;;  %v2077_v34 = vor.u32 %v2734_v24, %v2076_v23  ;;  %v2824_v43 = vld [vmem:[%s3378_s10 + $0x40c] sm:$0xf0]  ;;  %v2628_v44 = vld [vmem:[%s3378_s10 + $0x578] sm:$0xf]  ;;  %v2722_v50 = vld [vmem:[%s3378_s10 + $0xdc] sm:$0xf0] }
  0x98   : > { %1534 = vmatpush.bf16.msrb.mxu1 %v2193_v35  ;;  %v2269_v35 = vor.u32 %v2782_v27, %v2268_v25  ;;  %v2872_v45 = vld [vmem:[%s3378_s10 + $0x58c] sm:$0xf0]  ;;  %v2220_v51 = vld [vmem:[%s3378_s10 + $0x248] sm:$0xf]  ;;  %v2770_v53 = vld [vmem:[%s3378_s10 + $0x25c] sm:$0xf0] }
  0x99   : > { %1547 = vmatpush.bf16.msrb.mxu2 %v2385_v36  ;;  %v2461_v36 = vor.u32 %v2830_v29, %v2460_v28  ;;  %v2412_v54 = vld [vmem:[%s3378_s10 + $0x3c8] sm:$0xf]  ;;  %v2818_v55 = vld [vmem:[%s3378_s10 + $0x3dc] sm:$0xf0]  ;;  %v2221_v59 = vor.u32 %v2770_v53, %v2220_v51  ;;  %v2196_v63 = vld [vmem:[%s3378_s10 + $0x218] sm:$0xf] }
  0x9a   : > { %1560 = vmatpush.bf16.msrb.mxu3 %v2577_v40  ;;  %v2653_v40 = vor.u32 %v2878_v33, %v2652_v32  ;;  %v2604_v56 = vld [vmem:[%s3378_s10 + $0x548] sm:$0xf]  ;;  %v2866_v57 = vld [vmem:[%s3378_s10 + $0x55c] sm:$0xf0]  ;;  %v2413_v60 = vor.u32 %v2818_v55, %v2412_v54  ;;  %v2764_v1 = vld [vmem:[%s3378_s10 + $0x22c] sm:$0xf0] }
  0x9b   : > { %1522 = vmatpush.bf16.msrb.mxu0 %v1977_v46  ;;  %v2053_v46 = vor.u32 %v2728_v38, %v2052_v37  ;;  %v2605_v0 = vor.u32 %v2866_v57, %v2604_v56  ;;  %v2812_v3 = vld [vmem:[%s3378_s10 + $0x3ac] sm:$0xf0]  ;;  %v2580_v4 = vld [vmem:[%s3378_s10 + $0x518] sm:$0xf]  ;;  %v2197_v7 = vor.u32 %v2764_v1, %v2196_v63  ;;  %v2710_v10 = vld [vmem:[%s3378_s10 + $0x7c] sm:$0xf0] }
  0x9c   : > { %1535 = vmatpush.bf16.msrb.mxu1 %v2169_v47  ;;  %v2245_v47 = vor.u32 %v2776_v41, %v2244_v39  ;;  %v2860_v5 = vld [vmem:[%s3378_s10 + $0x52c] sm:$0xf0]  ;;  %v2172_v11 = vld [vmem:[%s3378_s10 + $0x1e8] sm:$0xf]  ;;  %v2806_v17 = vld [vmem:[%s3378_s10 + $0x37c] sm:$0xf0] }
  0x9d   : > { %1548 = vmatpush.bf16.msrb.mxu2 %v2361_v48  ;;  %v2437_v48 = vor.u32 %v2824_v43, %v2436_v42  ;;  %v2581_v12 = vor.u32 %v2860_v5, %v2580_v4  ;;  %v2556_v18 = vld [vmem:[%s3378_s10 + $0x4e8] sm:$0xf]  ;;  %v1956_v23 = vld [vmem:[%s3378_s10 + $0x38] sm:$0xf]  ;;  %v2704_v24 = vld [vmem:[%s3378_s10 + $0x4c] sm:$0xf0] }
  0x9e   : > { %1561 = vmatpush.bf16.msrb.mxu3 %v2553_v52  ;;  %v2629_v52 = vor.u32 %v2872_v45, %v2628_v44  ;;  %v2148_v25 = vld [vmem:[%s3378_s10 + $0x1b8] sm:$0xf]  ;;  %v2752_v27 = vld [vmem:[%s3378_s10 + $0x1cc] sm:$0xf0]  ;;  %v2124_v39 = vld [vmem:[%s3378_s10 + $0x188] sm:$0xf] }
  0x9f   : > { %1523 = vmatpush.bf16.msrb.mxu0 %v1953_v58  ;;  %v2029_v58 = vor.u32 %v2722_v50, %v2028_v49  ;;  %v2340_v28 = vld [vmem:[%s3378_s10 + $0x338] sm:$0xf]  ;;  %v2800_v29 = vld [vmem:[%s3378_s10 + $0x34c] sm:$0xf0]  ;;  %v2149_v37 = vor.u32 %v2752_v27, %v2148_v25  ;;  %v2316_v41 = vld [vmem:[%s3378_s10 + $0x308] sm:$0xf] }
  0xa0   : > { %1536 = vmatpush.bf16.msrb.mxu1 %v2145_v61  ;;  %v2004_v61 = vld [vmem:[%s3378_s10 + $0x98] sm:$0xf]  ;;  %v2848_v33 = vld [vmem:[%s3378_s10 + $0x4cc] sm:$0xf0]  ;;  %v2341_v38 = vor.u32 %v2800_v29, %v2340_v28  ;;  %v2794_v43 = vld [vmem:[%s3378_s10 + $0x31c] sm:$0xf0] }
  0xa1   : > { %1549 = vmatpush.bf16.msrb.mxu2 %v2337_v62  ;;  %v2716_v62 = vld [vmem:[%s3378_s10 + $0xac] sm:$0xf0]  ;;  %v2532_v32 = vld [vmem:[%s3378_s10 + $0x4b8] sm:$0xf]  ;;  %v2508_v44 = vld [vmem:[%s3378_s10 + $0x488] sm:$0xf]  ;;  %v2317_v54 = vor.u32 %v2794_v43, %v2316_v41 }
  0xa2   : > { %1562 = vmatpush.bf16.msrb.mxu3 %v2529_v2  ;;  %v2388_v2 = vld [vmem:[%s3378_s10 + $0x398] sm:$0xf]  ;;  %v2005_v6 = vor.u32 %v2716_v62, %v2004_v61  ;;  %v2533_v42 = vor.u32 %v2848_v33, %v2532_v32  ;;  %v2842_v45 = vld [vmem:[%s3378_s10 + $0x49c] sm:$0xf0]  ;;  %v2294_v50 = vld [vmem:[%s3378_s10 + $0x2f0] sm:$0xf0] }
  0xa3   : > { %1524 = vmatpush.bf16.msrb.mxu0 %v1929_v9  ;;  %v2389_v8 = vor.u32 %v2812_v3, %v2388_v2  ;;  %v1980_v9 = vld [vmem:[%s3378_s10 + $0x68] sm:$0xf]  ;;  %v2833_v51 = vld [vmem:[%s3378_s10 + $0x45c] sm:$0xf]  ;;  %v2678_v56 = vld [vmem:[%s3378_s10 + $0x5f0] sm:$0xf0]  ;;  %v2509_v57 = vor.u32 %v2842_v45, %v2508_v44 }
  0xa4   : > { %1537 = vmatpush.bf16.msrb.mxu1 %v2121_v13  ;;  %v2758_v13 = vld [vmem:[%s3378_s10 + $0x1fc] sm:$0xf0]  ;;  %v2881_v55 = vld [vmem:[%s3378_s10 + $0x5dc] sm:$0xf]  ;;  %v2731_v61 = vld [vmem:[%s3378_s10 + $0x12c] sm:$0xf] }
  0xa5   : > { %1550 = vmatpush.bf16.msrb.mxu2 %v2313_v14  ;;  %v2364_v14 = vld [vmem:[%s3378_s10 + $0x368] sm:$0xf]  ;;  %v2078_v62 = vld [vmem:[%s3378_s10 + $0x140] sm:$0xf0]  ;;  %v2779_v63 = vld [vmem:[%s3378_s10 + $0x2ac] sm:$0xf] }
  0xa6   : > { %1563 = vmatpush.bf16.msrb.mxu3 %v2505_v19  ;;  %1525 = vmatmul.bf16.vlgmr.msrb.gmra.mxu0 %v3493_v30  ;;  %v2854_v19 = vld [vmem:[%s3378_s10 + $0x4fc] sm:$0xf0]  ;;  %v2270_v1 = vld [vmem:[%s3378_s10 + $0x2c0] sm:$0xf0]  ;;  %v2827_v2 = vld [vmem:[%s3378_s10 + $0x42c] sm:$0xf] }
  0xa7   : > { %1569 = vmatpush.bf16.msra.mxu0 %v2101_v20  ;;  %1538 = vmatmul.bf16.vlgmr.msrb.gmra.mxu1 %v3495_v31  ;;  %v1981_v20 = vor.u32 %v2710_v10, %v1980_v9  ;;  %v2462_v3 = vld [vmem:[%s3378_s10 + $0x440] sm:$0xf0]  ;;  %v2875_v4 = vld [vmem:[%s3378_s10 + $0x5ac] sm:$0xf]  ;;  %v2725_v9 = vld [vmem:[%s3378_s10 + $0xfc] sm:$0xf] }
  0xa8   : > { %1582 = vmatpush.bf16.msra.mxu1 %v2293_v21  ;;  %1551 = vmatmul.bf16.vlgmr.msrb.gmra.mxu2 %v3481_v15  ;;  %v2173_v21 = vor.u32 %v2758_v13, %v2172_v11  ;;  %v2654_v5 = vld [vmem:[%s3378_s10 + $0x5c0] sm:$0xf0]  ;;  %v2054_v10 = vld [vmem:[%s3378_s10 + $0x110] sm:$0xf0]  ;;  %v2773_v11 = vld [vmem:[%s3378_s10 + $0x27c] sm:$0xf] }
  0xa9   : > { %1595 = vmatpush.bf16.msra.mxu2 %v2485_v22  ;;  %1564 = vmatmul.bf16.vlgmr.msrb.gmra.mxu3 %v3483_v16  ;;  %v2365_v22 = vor.u32 %v2806_v17, %v2364_v14  ;;  %v2246_v13 = vld [vmem:[%s3378_s10 + $0x290] sm:$0xf0]  ;;  %v2821_v14 = vld [vmem:[%s3378_s10 + $0x3fc] sm:$0xf]  ;;  %v2767_v25 = vld [vmem:[%s3378_s10 + $0x24c] sm:$0xf] }
  0xaa   : > { %1608 = vmatpush.bf16.msra.mxu3 %v2677_v26  ;;  %v2557_v26 = vor.u32 %v2854_v19, %v2556_v18  ;;  %v2438_v17 = vld [vmem:[%s3378_s10 + $0x410] sm:$0xf0]  ;;  %v2869_v18 = vld [vmem:[%s3378_s10 + $0x57c] sm:$0xf]  ;;  %v2222_v27 = vld [vmem:[%s3378_s10 + $0x260] sm:$0xf0] }
  0xab   : > { %1570 = vmatpush.bf16.msra.mxu0 %v2077_v34  ;;  %v1957_v34 = vor.u32 %v2704_v24, %v1956_v23  ;;  %v2630_v19 = vld [vmem:[%s3378_s10 + $0x590] sm:$0xf0]  ;;  %v2719_v23 = vld [vmem:[%s3378_s10 + $0xcc] sm:$0xf]  ;;  %v2030_v24 = vld [vmem:[%s3378_s10 + $0xe0] sm:$0xf0] }
  0xac   : > { %1583 = vmatpush.bf16.msra.mxu1 %v2269_v35  ;;  %v1932_v35 = vld [vmem:[%s3378_s10 + $0x8] sm:$0xf]  ;;  %v2815_v28 = vld [vmem:[%s3378_s10 + $0x3cc] sm:$0xf]  ;;  %v2414_v29 = vld [vmem:[%s3378_s10 + $0x3e0] sm:$0xf0] }
  0xad   : > { %1596 = vmatpush.bf16.msra.mxu2 %v2461_v36  ;;  %v2698_v36 = vld [vmem:[%s3378_s10 + $0x1c] sm:$0xf0]  ;;  %v2863_v32 = vld [vmem:[%s3378_s10 + $0x54c] sm:$0xf]  ;;  %v2606_v33 = vld [vmem:[%s3378_s10 + $0x560] sm:$0xf0] }
  0xae   : > { %1609 = vmatpush.bf16.msra.mxu3 %v2653_v40  ;;  %v2746_v40 = vld [vmem:[%s3378_s10 + $0x19c] sm:$0xf0]  ;;  %v1933_v49 = vor.u32 %v2698_v36, %v1932_v35  ;;  %v2225_v35 = vor.u32 %v2767_v25, %v2222_v27  ;;  %v2417_v36 = vor.u32 %v2815_v28, %v2414_v29  ;;  %v2198_v41 = vld [vmem:[%s3378_s10 + $0x230] sm:$0xf0]  ;;  %v2857_v44 = vld [vmem:[%s3378_s10 + $0x51c] sm:$0xf] }
  0xaf   : > { %1571 = vmatpush.bf16.msra.mxu0 %v2053_v46  ;;  %v2737_v46 = vld [vmem:[%s3378_s10 + $0x15c] sm:$0xf]  ;;  %v2125_v53 = vor.u32 %v2746_v40, %v2124_v39  ;;  %v2609_v40 = vor.u32 %v2863_v32, %v2606_v33  ;;  %v2390_v43 = vld [vmem:[%s3378_s10 + $0x3b0] sm:$0xf0]  ;;  %v2492_v25 = vld [vmem:[%s3378_s10 + $0x460] sm:$0xf] }
  0xb0   : > { %1584 = vmatpush.bf16.msra.mxu1 %v2245_v47  ;;  %v2102_v47 = vld [vmem:[%s3378_s10 + $0x170] sm:$0xf0]  ;;  %v2761_v39 = vld [vmem:[%s3378_s10 + $0x21c] sm:$0xf]  ;;  %v2684_v29 = vld [vmem:[%s3378_s10 + $0x5e0] sm:$0xf] }
  0xb1   : > { %1597 = vmatpush.bf16.msra.mxu2 %v2437_v48  ;;  %v2785_v48 = vld [vmem:[%s3378_s10 + $0x2dc] sm:$0xf]  ;;  %v2582_v45 = vld [vmem:[%s3378_s10 + $0x530] sm:$0xf0]  ;;  %v2885_v32 = vld [vmem:[%s3378_s10 + $0x5f4] sm:$0xf0] }
  0xb2   : > { %1610 = vmatpush.bf16.msra.mxu3 %v2629_v52  ;;  %v2486_v52 = vld [vmem:[%s3378_s10 + $0x470] sm:$0xf0]  ;;  %s3809_s21 = scalar_lea.vmem [#allocation8], %s2892_s17  ;;  %s2893_s23 = smul.u32 48, %s3280_s5 }
  0xb3   : > { %1572 = vmatpush.bf16.msra.mxu0 %v2029_v58  ;;  %v2105_v58 = vor.u32 %v2737_v46, %v2102_v47  ;;  %v2201_v47 = vor.u32 %v2761_v39, %v2198_v41  ;;  %v2276_v39 = vld [vmem:[%s3378_s10 + $0x2b0] sm:$0xf]  ;;  %v2783_v41 = vld [vmem:[%s3378_s10 + $0x2c4] sm:$0xf0]  ;;  %s1797_s15 = sshll.u32 %s3809_s21, 4  ;;  %s1784_s5 = scalar_lea.sflag [#allocation4], %s3364_s14  ;;  %s1798_s15 = int_to_ptr.vmem [resolvable:$true] %s1797_s15 }
  0xb4   : > { %1585 = vmatpush.bf16.msra.mxu1 %v2221_v59  ;;  %v2297_v59 = vor.u32 %v2785_v48, %v2294_v50  ;;  %v1982_v50 = vld [vmem:[%s3378_s10 + $0x80] sm:$0xf0]  ;;  %s1795_s8 = scalar_lea.hbm %s3871_s3, %s2893_s23  ;;  %s3086_s19 = scalar_lea.hbm %s3871_s3, 144 }
  0xb5   : > { %1598 = vmatpush.bf16.msra.mxu2 %v2413_v60  ;;  %v2489_v60 = vor.u32 %v2833_v51, %v2486_v52  ;;  %v2755_v51 = vld [vmem:[%s3378_s10 + $0x1ec] sm:$0xf]  ;;  %v2585_v52 = vor.u32 %v2857_v44, %v2582_v45  ;;  %v2660_v44 = vld [vmem:[%s3378_s10 + $0x5b0] sm:$0xf]  ;;  %v2879_v45 = vld [vmem:[%s3378_s10 + $0x5c4] sm:$0xf0] }
  0xb6   : > { %1611 = vmatpush.bf16.msra.mxu3 %v2605_v0  ;;  %v2681_v0 = vor.u32 %v2881_v55, %v2678_v56  ;;  %v2366_v55 = vld [vmem:[%s3378_s10 + $0x380] sm:$0xf0]  ;;  %v2851_v56 = vld [vmem:[%s3378_s10 + $0x4ec] sm:$0xf]  ;;  %s1799_s6 = sshll.u32 %s1795_s8, 4  ;;  %s1800_s6 = int_to_ptr.hbm [resolvable:$true] %s1799_s6 }
  0xb7   : > { %1573 = vmatpush.bf16.msra.mxu0 %v2005_v6  ;;  %v2081_v6 = vor.u32 %v2731_v61, %v2078_v62  ;;  %v2701_v61 = vld [vmem:[%s3378_s10 + $0x3c] sm:$0xf]  ;;  %v1958_v62 = vld [vmem:[%s3378_s10 + $0x50] sm:$0xf0]  ;;  %s3080_s12 = sshra.s32 %s1800_s6, 4  ;;  %s3081_s12 = int_to_ptr.hbm [resolvable:$true] %s3080_s12 }
  0xb8   : > { %1586 = vmatpush.bf16.msra.mxu1 %v2197_v7  ;;  %v2273_v7 = vor.u32 %v2779_v63, %v2270_v1  ;;  %v2749_v63 = vld [vmem:[%s3378_s10 + $0x1bc] sm:$0xf]  ;;  %v2150_v1 = vld [vmem:[%s3378_s10 + $0x1d0] sm:$0xf0]  ;;  %s3082_s1 = scalar_lea.hbm %s3081_s12, 48  ;;  %p3087_p4 = scmp.lt.s32.totalorder %s3081_s12, %s3871_s3 }
  0xb9   : > { %1599 = vmatpush.bf16.msra.mxu2 %v2389_v8  ;;  %v2465_v8 = vor.u32 %v2827_v2, %v2462_v3  ;;  %v2797_v2 = vld [vmem:[%s3378_s10 + $0x33c] sm:$0xf]  ;;  %v2342_v3 = vld [vmem:[%s3378_s10 + $0x350] sm:$0xf0]  ;;  %p3083_p8 = scmp.ne.s32.totalorder %s3081_s12, %s3082_s1  ;;  %p3088_p12 = scmp.lt.s32.totalorder %s3086_s19, %s3082_s1 }
  0xba   : > { %1612 = vmatpush.bf16.msra.mxu3 %v2581_v12  ;;  %v2657_v12 = vor.u32 %v2875_v4, %v2654_v5  ;;  %v2845_v4 = vld [vmem:[%s3378_s10 + $0x4bc] sm:$0xf]  ;;  %v2534_v5 = vld [vmem:[%s3378_s10 + $0x4d0] sm:$0xf0] }
  0xbb   : > { %1574 = vmatpush.bf16.msra.mxu0 %v1981_v20  ;;  %v2057_v20 = vor.u32 %v2725_v9, %v2054_v10  ;;  %v2153_v9 = vor.u32 %v2749_v63, %v2150_v1  ;;  %v2345_v10 = vor.u32 %v2797_v2, %v2342_v3  ;;  %v2228_v63 = vld [vmem:[%s3378_s10 + $0x250] sm:$0xf]  ;;  %v2771_v1 = vld [vmem:[%s3378_s10 + $0x264] sm:$0xf0]  ;;  %p3084_p10 = pnand %p3083_p8, %p3313_p0  ;;  %p3089_p13 = por %p3088_p12, %p3087_p4 }
  0xbc   : > { %1587 = vmatpush.bf16.msra.mxu1 %v2173_v21  ;;  %v2249_v21 = vor.u32 %v2773_v11, %v2246_v13  ;;  %v2743_v11 = vld [vmem:[%s3378_s10 + $0x18c] sm:$0xf]  ;;  %v2420_v2 = vld [vmem:[%s3378_s10 + $0x3d0] sm:$0xf]  ;;  %v2819_v3 = vld [vmem:[%s3378_s10 + $0x3e4] sm:$0xf0] }
  0xbd   : > { %1600 = vmatpush.bf16.msra.mxu2 %v2365_v22  ;;  %v2441_v22 = vor.u32 %v2821_v14, %v2438_v17  ;;  %v2791_v13 = vld [vmem:[%s3378_s10 + $0x30c] sm:$0xf]  ;;  %v2537_v14 = vor.u32 %v2845_v4, %v2534_v5  ;;  %v2318_v17 = vld [vmem:[%s3378_s10 + $0x320] sm:$0xf0]  ;;  %v2612_v4 = vld [vmem:[%s3378_s10 + $0x550] sm:$0xf]  ;;  %p3085_p9 = pneg %p3084_p10 }
  0xbe   : > { %1613 = vmatpush.bf16.msra.mxu3 %v2557_v26  ;;  %v2633_v26 = vor.u32 %v2869_v18, %v2630_v19  ;;  %v2839_v18 = vld [vmem:[%s3378_s10 + $0x48c] sm:$0xf]  ;;  %v2510_v19 = vld [vmem:[%s3378_s10 + $0x4a0] sm:$0xf0]  ;;  %v2321_v28 = vor.u32 %v2791_v13, %v2318_v17  ;;  %v2867_v5 = vld [vmem:[%s3378_s10 + $0x564] sm:$0xf0] }
  0xbf   : > { %1575 = vmatpush.bf16.msra.mxu0 %v1957_v34  ;;  %v2033_v34 = vor.u32 %v2719_v23, %v2030_v24  ;;  %v2789_v24 = vld [vmem:[%s3378_s10 + $0x2f4] sm:$0xf0]  ;;  %v2513_v33 = vor.u32 %v2839_v18, %v2510_v19  ;;  %v2588_v18 = vld [vmem:[%s3378_s10 + $0x520] sm:$0xf]  ;;  %p3090_p1 = pnand %p3089_p13, %p3085_p9 }
  0xc0   : > { %1588 = vmatpush.bf16.msra.mxu1 %v2149_v37  ;;  %v2713_v37 = vld [vmem:[%s3378_s10 + $0x9c] sm:$0xf]  ;;  %v2765_v13 = vld [vmem:[%s3378_s10 + $0x234] sm:$0xf0] }
  0xc1   : > { %1601 = vmatpush.bf16.msra.mxu2 %v2341_v38  ;;  %v2006_v38 = vld [vmem:[%s3378_s10 + $0xb0] sm:$0xf0]  ;;  %v2813_v17 = vld [vmem:[%s3378_s10 + $0x3b4] sm:$0xf0] }
  0xc2   : > { %1614 = vmatpush.bf16.msra.mxu3 %v2533_v42  ;;  %v2809_v42 = vld [vmem:[%s3378_s10 + $0x39c] sm:$0xf]  ;;  %v2009_v46 = vor.u32 %v2713_v37, %v2006_v38  ;;  %v2084_v37 = vld [vmem:[%s3378_s10 + $0x130] sm:$0xf]  ;;  %v2735_v38 = vld [vmem:[%s3378_s10 + $0x144] sm:$0xf0] }
  0xc3   : > { %1576 = vmatpush.bf16.msra.mxu0 %v1933_v49  ;;  %v2393_v48 = vor.u32 %v2809_v42, %v2390_v43  ;;  %v2707_v49 = vld [vmem:[%s3378_s10 + $0x6c] sm:$0xf]  ;;  %v2468_v42 = vld [vmem:[%s3378_s10 + $0x430] sm:$0xf]  ;;  %v2831_v43 = vld [vmem:[%s3378_s10 + $0x444] sm:$0xf0] }
  0xc4   : > { %1589 = vmatpush.bf16.msra.mxu1 %v2125_v53  ;;  %v2174_v53 = vld [vmem:[%s3378_s10 + $0x200] sm:$0xf0]  ;;  %v2861_v19 = vld [vmem:[%s3378_s10 + $0x534] sm:$0xf0] }
  0xc5   : > { %1602 = vmatpush.bf16.msra.mxu2 %v2317_v54  ;;  %v2803_v54 = vld [vmem:[%s3378_s10 + $0x36c] sm:$0xf] }
  0xc6   : > { %1615 = vmatpush.bf16.msra.mxu3 %v2509_v57  ;;  %1577 = vmatmul.bf16.vlgmr.msra.gmra.mxu0 %v3493_v30  ;;  %v2558_v57 = vld [vmem:[%s3378_s10 + $0x500] sm:$0xf0] }
  0xc7   : > { %1621 = vmatpush.bf16.msrb.mxu0 %v2105_v58  ;;  %1590 = vmatmul.bf16.vlgmr.msra.gmra.mxu1 %v3495_v31  ;;  %v1985_v58 = vor.u32 %v2707_v49, %v1982_v50  ;;  %v2060_v49 = vld [vmem:[%s3378_s10 + $0x100] sm:$0xf]  ;;  %v2729_v50 = vld [vmem:[%s3378_s10 + $0x114] sm:$0xf0] }
  0xc8   : > { %1634 = vmatpush.bf16.msrb.mxu1 %v2297_v59  ;;  %1603 = vmatmul.bf16.vlgmr.msra.gmra.mxu2 %v3481_v15  ;;  %v2177_v59 = vor.u32 %v2755_v51, %v2174_v53  ;;  %v2252_v51 = vld [vmem:[%s3378_s10 + $0x280] sm:$0xf]  ;;  %v2777_v53 = vld [vmem:[%s3378_s10 + $0x294] sm:$0xf0] }
  0xc9   : > { %1647 = vmatpush.bf16.msrb.mxu2 %v2489_v60  ;;  %1616 = vmatmul.bf16.vlgmr.msra.gmra.mxu3 %v3483_v16  ;;  %v2369_v60 = vor.u32 %v2803_v54, %v2366_v55  ;;  %v2444_v54 = vld [vmem:[%s3378_s10 + $0x400] sm:$0xf]  ;;  %v2825_v55 = vld [vmem:[%s3378_s10 + $0x414] sm:$0xf0] }
  0xca   : > { %1660 = vmatpush.bf16.msrb.mxu3 %v2681_v0  ;;  %v2561_v0 = vor.u32 %v2851_v56, %v2558_v57  ;;  %v2636_v56 = vld [vmem:[%s3378_s10 + $0x580] sm:$0xf]  ;;  %v2873_v57 = vld [vmem:[%s3378_s10 + $0x594] sm:$0xf0] }
  0xcb   : > { %1622 = vmatpush.bf16.msrb.mxu0 %v2081_v6  ;;  %v1961_v6 = vor.u32 %v2701_v61, %v1958_v62  ;;  %v2036_v61 = vld [vmem:[%s3378_s10 + $0xd0] sm:$0xf]  ;;  %v2723_v62 = vld [vmem:[%s3378_s10 + $0xe4] sm:$0xf0] }
  0xcc   : > { %1635 = vmatpush.bf16.msrb.mxu1 %v2273_v7  ;;  %v2695_v7 = vld [vmem:[%s3378_s10 + $0xc] sm:$0xf] }
  0xcd   : > { %1648 = vmatpush.bf16.msrb.mxu2 %v2465_v8  ;;  %v1934_v8 = vld [vmem:[%s3378_s10 + $0x20] sm:$0xf0] }
  0xce   : > { %1661 = vmatpush.bf16.msrb.mxu3 %v2657_v12  ;;  %v2126_v12 = vld [vmem:[%s3378_s10 + $0x1a0] sm:$0xf0]  ;;  %v1937_v23 = vor.u32 %v2695_v7, %v1934_v8  ;;  %v2229_v7 = vor.u32 %v2771_v1, %v2228_v63  ;;  %v2421_v8 = vor.u32 %v2819_v3, %v2420_v2 }
  0xcf   : > { %1623 = vmatpush.bf16.msrb.mxu0 %v2057_v20  ;;  %v2108_v20 = vld [vmem:[%s3378_s10 + $0x160] sm:$0xf]  ;;  %v2129_v27 = vor.u32 %v2743_v11, %v2126_v12  ;;  %v2613_v12 = vor.u32 %v2867_v5, %v2612_v4  ;;  %v2834_v63 = vld [vmem:[%s3378_s10 + $0x464] sm:$0xf]  ;;  %v2686_v4 = vld [vmem:[%s3378_s10 + $0x5f8] sm:$0xf0] }
  0xd0   : > { %1636 = vmatpush.bf16.msrb.mxu1 %v2249_v21  ;;  %v2741_v21 = vld [vmem:[%s3378_s10 + $0x174] sm:$0xf0]  ;;  %v2204_v11 = vld [vmem:[%s3378_s10 + $0x220] sm:$0xf]  ;;  %v2882_v3 = vld [vmem:[%s3378_s10 + $0x5e4] sm:$0xf] }
  0xd1   : > { %1649 = vmatpush.bf16.msrb.mxu2 %v2441_v22  ;;  %v2300_v22 = vld [vmem:[%s3378_s10 + $0x2e0] sm:$0xf] }
  0xd2   : > { %1662 = vmatpush.bf16.msrb.mxu3 %v2633_v26  ;;  %v2837_v26 = vld [vmem:[%s3378_s10 + $0x474] sm:$0xf0] }
  0xd3   : > { %1624 = vmatpush.bf16.msrb.mxu0 %v2033_v34  ;;  %v2109_v34 = vor.u32 %v2741_v21, %v2108_v20  ;;  %v2205_v21 = vor.u32 %v2765_v13, %v2204_v11  ;;  %v2780_v11 = vld [vmem:[%s3378_s10 + $0x2b4] sm:$0xf]  ;;  %v2278_v13 = vld [vmem:[%s3378_s10 + $0x2c8] sm:$0xf0] }
  0xd4   : > { %1637 = vmatpush.bf16.msrb.mxu1 %v2225_v35  ;;  %v2301_v35 = vor.u32 %v2789_v24, %v2300_v22  ;;  %v2711_v24 = vld [vmem:[%s3378_s10 + $0x84] sm:$0xf0] }
  0xd5   : > { %1650 = vmatpush.bf16.msrb.mxu2 %v2417_v36  ;;  %v2493_v36 = vor.u32 %v2837_v26, %v2492_v25  ;;  %v2180_v25 = vld [vmem:[%s3378_s10 + $0x1f0] sm:$0xf]  ;;  %v2589_v26 = vor.u32 %v2861_v19, %v2588_v18  ;;  %v2876_v18 = vld [vmem:[%s3378_s10 + $0x5b4] sm:$0xf]  ;;  %v2662_v19 = vld [vmem:[%s3378_s10 + $0x5c8] sm:$0xf0] }
  0xd6   : > { %1663 = vmatpush.bf16.msrb.mxu3 %v2609_v40  ;;  %v2685_v40 = vor.u32 %v2885_v32, %v2684_v29  ;;  %v2807_v29 = vld [vmem:[%s3378_s10 + $0x384] sm:$0xf0]  ;;  %v2564_v32 = vld [vmem:[%s3378_s10 + $0x4f0] sm:$0xf] }
  0xd7   : > { %1625 = vmatpush.bf16.msrb.mxu0 %v2009_v46  ;;  %v2085_v46 = vor.u32 %v2735_v38, %v2084_v37  ;;  %v1964_v37 = vld [vmem:[%s3378_s10 + $0x40] sm:$0xf]  ;;  %v2705_v38 = vld [vmem:[%s3378_s10 + $0x54] sm:$0xf0] }
  0xd8   : > { %1638 = vmatpush.bf16.msrb.mxu1 %v2201_v47  ;;  %v2277_v47 = vor.u32 %v2783_v41, %v2276_v39  ;;  %v2156_v39 = vld [vmem:[%s3378_s10 + $0x1c0] sm:$0xf]  ;;  %v2753_v41 = vld [vmem:[%s3378_s10 + $0x1d4] sm:$0xf0] }
  0xd9   : > { %1651 = vmatpush.bf16.msrb.mxu2 %v2393_v48  ;;  %v2469_v48 = vor.u32 %v2831_v43, %v2468_v42  ;;  %v2348_v42 = vld [vmem:[%s3378_s10 + $0x340] sm:$0xf]  ;;  %v2801_v43 = vld [vmem:[%s3378_s10 + $0x354] sm:$0xf0] }
  0xda   : > { %1664 = vmatpush.bf16.msrb.mxu3 %v2585_v52  ;;  %v2661_v52 = vor.u32 %v2879_v45, %v2660_v44  ;;  %v2540_v44 = vld [vmem:[%s3378_s10 + $0x4c0] sm:$0xf]  ;;  %v2849_v45 = vld [vmem:[%s3378_s10 + $0x4d4] sm:$0xf0] }
  0xdb   : > { %1626 = vmatpush.bf16.msrb.mxu0 %v1985_v58  ;;  %v2061_v58 = vor.u32 %v2729_v50, %v2060_v49  ;;  %v2157_v49 = vor.u32 %v2753_v41, %v2156_v39  ;;  %v2349_v50 = vor.u32 %v2801_v43, %v2348_v42  ;;  %v2768_v39 = vld [vmem:[%s3378_s10 + $0x254] sm:$0xf]  ;;  %v2230_v41 = vld [vmem:[%s3378_s10 + $0x268] sm:$0xf0] }
  0xdc   : > { %1639 = vmatpush.bf16.msrb.mxu1 %v2177_v59  ;;  %v2253_v59 = vor.u32 %v2777_v53, %v2252_v51  ;;  %v2132_v51 = vld [vmem:[%s3378_s10 + $0x190] sm:$0xf]  ;;  %v2816_v42 = vld [vmem:[%s3378_s10 + $0x3d4] sm:$0xf]  ;;  %v2422_v43 = vld [vmem:[%s3378_s10 + $0x3e8] sm:$0xf0] }
  0xdd   : > { %1652 = vmatpush.bf16.msrb.mxu2 %v2369_v60  ;;  %v2445_v60 = vor.u32 %v2825_v55, %v2444_v54  ;;  %v2324_v53 = vld [vmem:[%s3378_s10 + $0x310] sm:$0xf]  ;;  %v2541_v54 = vor.u32 %v2849_v45, %v2540_v44  ;;  %v2795_v55 = vld [vmem:[%s3378_s10 + $0x324] sm:$0xf0]  ;;  %v2864_v44 = vld [vmem:[%s3378_s10 + $0x554] sm:$0xf] }
  0xde   : > { %1665 = vmatpush.bf16.msrb.mxu3 %v2561_v0  ;;  %v2637_v0 = vor.u32 %v2873_v57, %v2636_v56  ;;  %v2516_v56 = vld [vmem:[%s3378_s10 + $0x490] sm:$0xf]  ;;  %v2843_v57 = vld [vmem:[%s3378_s10 + $0x4a4] sm:$0xf0]  ;;  %v2325_v2 = vor.u32 %v2795_v55, %v2324_v53  ;;  %v2614_v45 = vld [vmem:[%s3378_s10 + $0x568] sm:$0xf0] }
  0xdf   : > { %1627 = vmatpush.bf16.msrb.mxu0 %v1961_v6  ;;  %v2037_v6 = vor.u32 %v2723_v62, %v2036_v61  ;;  %v2302_v62 = vld [vmem:[%s3378_s10 + $0x2f8] sm:$0xf0]  ;;  %v2517_v5 = vor.u32 %v2843_v57, %v2516_v56  ;;  %v2858_v56 = vld [vmem:[%s3378_s10 + $0x524] sm:$0xf] }
  0xe0   : > { %1640 = vmatpush.bf16.msrb.mxu1 %v2153_v9  ;;  %v2012_v9 = vld [vmem:[%s3378_s10 + $0xa0] sm:$0xf]  ;;  %v2206_v53 = vld [vmem:[%s3378_s10 + $0x238] sm:$0xf0] }
  0xe1   : > { %1653 = vmatpush.bf16.msrb.mxu2 %v2345_v10  ;;  %v2717_v10 = vld [vmem:[%s3378_s10 + $0xb4] sm:$0xf0]  ;;  %v2398_v55 = vld [vmem:[%s3378_s10 + $0x3b8] sm:$0xf0] }
  0xe2   : > { %1666 = vmatpush.bf16.msrb.mxu3 %v2537_v14  ;;  %v2396_v14 = vld [vmem:[%s3378_s10 + $0x3a0] sm:$0xf]  ;;  %v2013_v20 = vor.u32 %v2717_v10, %v2012_v9  ;;  %v2732_v9 = vld [vmem:[%s3378_s10 + $0x134] sm:$0xf]  ;;  %v2086_v10 = vld [vmem:[%s3378_s10 + $0x148] sm:$0xf0] }
  0xe3   : > { %1628 = vmatpush.bf16.msrb.mxu0 %v1937_v23  ;;  %v2397_v22 = vor.u32 %v2813_v17, %v2396_v14  ;;  %v1988_v23 = vld [vmem:[%s3378_s10 + $0x70] sm:$0xf]  ;;  %v2828_v14 = vld [vmem:[%s3378_s10 + $0x434] sm:$0xf]  ;;  %v2470_v17 = vld [vmem:[%s3378_s10 + $0x448] sm:$0xf0] }
  0xe4   : > { %1641 = vmatpush.bf16.msrb.mxu1 %v2129_v27  ;;  %v2759_v27 = vld [vmem:[%s3378_s10 + $0x204] sm:$0xf0]  ;;  %v2590_v57 = vld [vmem:[%s3378_s10 + $0x538] sm:$0xf0] }
  0xe5   : > { %1654 = vmatpush.bf16.msrb.mxu2 %v2321_v28  ;;  %v2372_v28 = vld [vmem:[%s3378_s10 + $0x370] sm:$0xf] }
  0xe6   : > { %1667 = vmatpush.bf16.msrb.mxu3 %v2513_v33  ;;  %1629 = vmatmul.bf16.vlgmr.msrb.gmra.mxu0 %v3493_v30  ;;  %v2855_v33 = vld [vmem:[%s3378_s10 + $0x504] sm:$0xf0] }
  0xe7   : > { %1673 = vmatpush.bf16.msra.mxu0 %v2109_v34  ;;  %1642 = vmatmul.bf16.vlgmr.msrb.gmra.mxu1 %v3495_v31  ;;  %v1989_v34 = vor.u32 %v2711_v24, %v1988_v23  ;;  %v2726_v23 = vld [vmem:[%s3378_s10 + $0x104] sm:$0xf]  ;;  %v2062_v24 = vld [vmem:[%s3378_s10 + $0x118] sm:$0xf0] }
  0xe8   : > { %1686 = vmatpush.bf16.msra.mxu1 %v2301_v35  ;;  %1655 = vmatmul.bf16.vlgmr.msrb.gmra.mxu2 %v3481_v15  ;;  %v2181_v35 = vor.u32 %v2759_v27, %v2180_v25  ;;  %v2774_v25 = vld [vmem:[%s3378_s10 + $0x284] sm:$0xf]  ;;  %v2254_v27 = vld [vmem:[%s3378_s10 + $0x298] sm:$0xf0] }
  0xe9   : > { %1699 = vmatpush.bf16.msra.mxu2 %v2493_v36  ;;  %1668 = vmatmul.bf16.vlgmr.msrb.gmra.mxu3 %v3483_v16  ;;  %v2373_v36 = vor.u32 %v2807_v29, %v2372_v28  ;;  %v2822_v28 = vld [vmem:[%s3378_s10 + $0x404] sm:$0xf]  ;;  %v2446_v29 = vld [vmem:[%s3378_s10 + $0x418] sm:$0xf0] }
  0xea   : > { %1712 = vmatpush.bf16.msra.mxu3 %v2685_v40  ;;  %v2565_v40 = vor.u32 %v2855_v33, %v2564_v32  ;;  %v2870_v32 = vld [vmem:[%s3378_s10 + $0x584] sm:$0xf]  ;;  %v2638_v33 = vld [vmem:[%s3378_s10 + $0x598] sm:$0xf0] }
  0xeb   : > { %1674 = vmatpush.bf16.msra.mxu0 %v2085_v46  ;;  %v1965_v46 = vor.u32 %v2705_v38, %v1964_v37  ;;  %v2720_v37 = vld [vmem:[%s3378_s10 + $0xd4] sm:$0xf]  ;;  %v2038_v38 = vld [vmem:[%s3378_s10 + $0xe8] sm:$0xf0] }
  0xec   : > { %1687 = vmatpush.bf16.msra.mxu1 %v2277_v47  ;;  %v1940_v47 = vld [vmem:[%s3378_s10 + $0x10] sm:$0xf] }
  0xed   : > { %1700 = vmatpush.bf16.msra.mxu2 %v2469_v48  ;;  %v2699_v48 = vld [vmem:[%s3378_s10 + $0x24] sm:$0xf0] }
  0xee   : > { %1713 = vmatpush.bf16.msra.mxu3 %v2661_v52  ;;  %v2747_v52 = vld [vmem:[%s3378_s10 + $0x1a4] sm:$0xf0]  ;;  %v1941_v61 = vor.u32 %v2699_v48, %v1940_v47  ;;  %v2233_v47 = vor.u32 %v2768_v39, %v2230_v41  ;;  %v2425_v48 = vor.u32 %v2816_v42, %v2422_v43  ;;  %v2518_v41 = vld [vmem:[%s3378_s10 + $0x4a8] sm:$0xf0] }
  0xef   : > { %1675 = vmatpush.bf16.msra.mxu0 %v2061_v58  ;;  %v2738_v58 = vld [vmem:[%s3378_s10 + $0x164] sm:$0xf]  ;;  %v2133_v1 = vor.u32 %v2747_v52, %v2132_v51  ;;  %v2617_v52 = vor.u32 %v2864_v44, %v2614_v45 }
  0xf0   : > { %1688 = vmatpush.bf16.msra.mxu1 %v2253_v59  ;;  %v2110_v59 = vld [vmem:[%s3378_s10 + $0x178] sm:$0xf0]  ;;  %v2762_v51 = vld [vmem:[%s3378_s10 + $0x224] sm:$0xf] }
  0xf1   : > { %1701 = vmatpush.bf16.msra.mxu2 %v2445_v60  ;;  %v2786_v60 = vld [vmem:[%s3378_s10 + $0x2e4] sm:$0xf] }
  0xf2   : > { %1714 = vmatpush.bf16.msra.mxu3 %v2637_v0  ;;  %v2494_v0 = vld [vmem:[%s3378_s10 + $0x478] sm:$0xf0] }
  0xf3   : > { %1676 = vmatpush.bf16.msra.mxu0 %v2037_v6  ;;  %v2113_v6 = vor.u32 %v2738_v58, %v2110_v59  ;;  %v2708_v59 = vld [vmem:[%s3378_s10 + $0x74] sm:$0xf] }
  0xf4   : > { %1689 = vmatpush.bf16.msra.mxu1 %v2229_v7  ;;  %v2305_v7 = vor.u32 %v2786_v60, %v2302_v62  ;;  %v2209_v60 = vor.u32 %v2762_v51, %v2206_v53  ;;  %v1990_v62 = vld [vmem:[%s3378_s10 + $0x88] sm:$0xf0] }
  0xf5   : > { %1702 = vmatpush.bf16.msra.mxu2 %v2421_v8  ;;  %v2497_v8 = vor.u32 %v2834_v63, %v2494_v0  ;;  %v2756_v63 = vld [vmem:[%s3378_s10 + $0x1f4] sm:$0xf]  ;;  %v3782_v0 = vld [vmem:[%s245_s22] sm:$0x3f] }
  0xf6   : > { %1715 = vmatpush.bf16.msra.mxu3 %v2613_v12  ;;  %v2689_v12 = vor.u32 %v2882_v3, %v2686_v4  ;;  %v2804_v3 = vld [vmem:[%s3378_s10 + $0x374] sm:$0xf]  ;;  %v2374_v4 = vld [vmem:[%s3378_s10 + $0x388] sm:$0xf0] }
  0xf7   : > { %1677 = vmatpush.bf16.msra.mxu0 %v2013_v20  ;;  %v2089_v20 = vor.u32 %v2732_v9, %v2086_v10  ;;  %v2377_v10 = vor.u32 %v2804_v3, %v2374_v4 }
  0xf8   : > { %1690 = vmatpush.bf16.msra.mxu1 %v2205_v21  ;;  %v2281_v21 = vor.u32 %v2780_v11, %v2278_v13  ;;  %v2702_v11 = vld [vmem:[%s3378_s10 + $0x44] sm:$0xf] }
  0xf9   : > { %1703 = vmatpush.bf16.msra.mxu2 %v2397_v22  ;;  %v2473_v22 = vor.u32 %v2828_v14, %v2470_v17  ;;  %v2750_v13 = vld [vmem:[%s3378_s10 + $0x1c4] sm:$0xf] }
  0xfa   : > { %1716 = vmatpush.bf16.msra.mxu3 %v2589_v26  ;;  %v2665_v26 = vor.u32 %v2876_v18, %v2662_v19  ;;  %v2158_v18 = vld [vmem:[%s3378_s10 + $0x1d8] sm:$0xf0]  ;;  %v2798_v19 = vld [vmem:[%s3378_s10 + $0x344] sm:$0xf] }
  0xfb   : > { %1678 = vmatpush.bf16.msra.mxu0 %v1989_v34  ;;  %v2065_v34 = vor.u32 %v2726_v23, %v2062_v24 }
  0xfc   : > { %1691 = vmatpush.bf16.msra.mxu1 %v2181_v35  ;;  %v2257_v35 = vor.u32 %v2774_v25, %v2254_v27 }
  0xfd   : > { %1704 = vmatpush.bf16.msra.mxu2 %v2373_v36  ;;  %v2449_v36 = vor.u32 %v2822_v28, %v2446_v29  ;;  %v2696_v28 = vld [vmem:[%s3378_s10 + $0x14] sm:$0xf]  ;;  %v1942_v29 = vld [vmem:[%s3378_s10 + $0x28] sm:$0xf0] }
  0xfe   : > { %1717 = vmatpush.bf16.msra.mxu3 %v2565_v40  ;;  %v2641_v40 = vor.u32 %v2870_v32, %v2638_v33  ;;  %v2744_v32 = vld [vmem:[%s3378_s10 + $0x194] sm:$0xf]  ;;  %v1945_v42 = vor.u32 %v2696_v28, %v1942_v29 }
  0xff   : > { %1679 = vmatpush.bf16.msra.mxu0 %v1965_v46  ;;  %v2041_v46 = vor.u32 %v2720_v37, %v2038_v38  ;;  %v2326_v37 = vld [vmem:[%s3378_s10 + $0x328] sm:$0xf0] }
 0x100   : > { %1692 = vmatpush.bf16.msra.mxu1 %v2157_v49  ;;  %v2714_v49 = vld [vmem:[%s3378_s10 + $0xa4] sm:$0xf] }
 0x101   : > { %1705 = vmatpush.bf16.msra.mxu2 %v2349_v50  ;;  %v2014_v50 = vld [vmem:[%s3378_s10 + $0xb8] sm:$0xf0] }
 0x102   : > { %1718 = vmatpush.bf16.msra.mxu3 %v2541_v54  ;;  %v2810_v54 = vld [vmem:[%s3378_s10 + $0x3a4] sm:$0xf]  ;;  %v2017_v58 = vor.u32 %v2714_v49, %v2014_v50 }
 0x103   : > { %1680 = vmatpush.bf16.msra.mxu0 %v1941_v61  ;;  %v2401_v61 = vor.u32 %v2810_v54, %v2398_v55 }
 0x104   : > { %1693 = vmatpush.bf16.msra.mxu1 %v2133_v1  ;;  %v2593_v1 = vor.u32 %v2858_v56, %v2590_v57 }
 0x105   : > { %1706 = vmatpush.bf16.msra.mxu2 %v2325_v2  ;;  %v2182_v2 = vld [vmem:[%s3378_s10 + $0x208] sm:$0xf0] }
 0x106   : > { %1719 = vmatpush.bf16.msra.mxu3 %v2517_v5  ;;  %1681 = vmatmul.bf16.vlgmr.msra.gmra.mxu0 %v3493_v30  ;;  %v2852_v5 = vld [vmem:[%s3378_s10 + $0x4f4] sm:$0xf]  ;;  %v2185_v9 = vor.u32 %v2756_v63, %v2182_v2 }
 0x107   : > { %1725 = vmatpush.bf16.msrb.mxu0 %v2113_v6  ;;  %1694 = vmatmul.bf16.vlgmr.msra.gmra.mxu1 %v3495_v31  ;;  %v2566_v6 = vld [vmem:[%s3378_s10 + $0x508] sm:$0xf0]  ;;  %v1487_v14 = vpop.f32.mrf.mxu1 }
 0x108   : > { %1738 = vmatpush.bf16.msrb.mxu1 %v2305_v7  ;;  %1707 = vmatmul.bf16.vlgmr.msra.gmra.mxu2 %v3481_v15  ;;  %v1993_v7 = vor.u32 %v2708_v59, %v1990_v62  ;;  %v2569_v17 = vor.u32 %v2852_v5, %v2566_v6 }
 0x109   : > { %1751 = vmatpush.bf16.msrb.mxu2 %v2497_v8  ;;  %1720 = vmatmul.bf16.vlgmr.msra.gmra.mxu3 %v3483_v16  ;;  %v479_v8 = vperm.slane %v3782_v0, 0  ;;  %v1474_v23 = vpop.f32.mrf.mxu0 }
 0x10a   : > { %1764 = vmatpush.bf16.msrb.mxu3 %v2689_v12  ;;  %v1966_v12 = vld [vmem:[%s3378_s10 + $0x58] sm:$0xf0] }
 0x10b   : > { %1726 = vmatpush.bf16.msrb.mxu0 %v2089_v20  ;;  %v2350_v20 = vld [vmem:[%s3378_s10 + $0x358] sm:$0xf0]  ;;  %v1969_v24 = vor.u32 %v2702_v11, %v1966_v12  ;;  %v1475_v25 = vadd.f32 %v1474_v23, %v479_v8  ;;  %v1500_v33 = vpop.f32.mrf.mxu2  ;;  %v482_v11 = vperm.slane %v3782_v0, 3 }
 0x10c   : > { %1739 = vmatpush.bf16.msrb.mxu1 %v2281_v21  ;;  %v2846_v21 = vld [vmem:[%s3378_s10 + $0x4c4] sm:$0xf]  ;;  %v2353_v27 = vor.u32 %v2798_v19, %v2350_v20  ;;  %v1513_v39 = vpop.f32.mrf.mxu3 }
 0x10d   : > { %1752 = vmatpush.bf16.msrb.mxu2 %v2473_v22  ;;  %v2542_v22 = vld [vmem:[%s3378_s10 + $0x4d8] sm:$0xf0]  ;;  %v1488_v38 = vadd.f32 %v1487_v14, %v1475_v25 }
 0x10e   : > { %1765 = vmatpush.bf16.msrb.mxu3 %v2665_v26  ;;  %v2161_v26 = vor.u32 %v2750_v13, %v2158_v18 }
 0x10f   : > { %1727 = vmatpush.bf16.msrb.mxu0 %v2065_v34  ;;  %v2545_v34 = vor.u32 %v2846_v21, %v2542_v22  ;;  %v1501_v43 = vadd.f32 %v1500_v33, %v1488_v38 }
 0x110   : > { %1740 = vmatpush.bf16.msrb.mxu1 %v2257_v35  ;;  %v2134_v35 = vld [vmem:[%s3378_s10 + $0x1a8] sm:$0xf0] }
 0x111   : > { %1753 = vmatpush.bf16.msrb.mxu2 %v2449_v36  ;;  %v2792_v36 = vld [vmem:[%s3378_s10 + $0x314] sm:$0xf]  ;;  %v2137_v44 = vor.u32 %v2744_v32, %v2134_v35  ;;  %v1476_v49 = vpop.f32.mrf.mxu0 }
 0x112   : > { %1766 = vmatpush.bf16.msrb.mxu3 %v2641_v40  ;;  %v2840_v40 = vld [vmem:[%s3378_s10 + $0x494] sm:$0xf]  ;;  %v2329_v45 = vor.u32 %v2792_v36, %v2326_v37 }
 0x113   : > { %1728 = vmatpush.bf16.msrb.mxu0 %v2041_v46  ;;  %v1489_v46 = vpop.f32.mrf.mxu1  ;;  %v1502_v50 = vpop.f32.mrf.mxu2 }
 0x114   : > { %1741 = vmatpush.bf16.msrb.mxu1 %v2233_v47  ;;  %v2521_v47 = vor.u32 %v2840_v40, %v2518_v41  ;;  %v1515_v51 = vpop.f32.mrf.mxu3  ;;  %v484_v41 = vperm.slane %v3782_v0, 5 }
 0x115   : > { %1754 = vmatpush.bf16.msrb.mxu2 %v2425_v48  ;;  %v1514_v48 = vadd.f32 %v1513_v39, %v1501_v43 }
 0x116   : > { %1767 = vmatpush.bf16.msrb.mxu3 %v2617_v52  ;;  %v480_v52 = vperm.slane %v3782_v0, 1 }
 0x117   : > { %1729 = vmatpush.bf16.msrb.mxu0 %v2017_v58  ;;  %1777 = vst [vmem:[%s3809_s21] sm:$0xff] %v1514_v48 }
 0x118   : > { %1742 = vmatpush.bf16.msrb.mxu1 %v2209_v60 }
 0x119   : > { %1755 = vmatpush.bf16.msrb.mxu2 %v2401_v61 }
 0x11a   : > { %1768 = vmatpush.bf16.msrb.mxu3 %v2593_v1 }
 0x11b   : > { %1730 = vmatpush.bf16.msrb.mxu0 %v1993_v7 }
 0x11c   : > { %1743 = vmatpush.bf16.msrb.mxu1 %v2185_v9 }
 0x11d   : > { %1756 = vmatpush.bf16.msrb.mxu2 %v2377_v10 }
 0x11e   : > { %1769 = vmatpush.bf16.msrb.mxu3 %v2569_v17 }
 0x11f   : > { %1731 = vmatpush.bf16.msrb.mxu0 %v1969_v24 }
 0x120   : > { %1744 = vmatpush.bf16.msrb.mxu1 %v2161_v26  ;;  %v483_v26 = vperm.slane %v3782_v0, 4 }
 0x121   : > { %1757 = vmatpush.bf16.msrb.mxu2 %v2353_v27 }
 0x122   : > { %1770 = vmatpush.bf16.msrb.mxu3 %v2545_v34 }
 0x123   : > { %1732 = vmatpush.bf16.msrb.mxu0 %v1945_v42  ;;  %v1526_v53 = vpop.f32.mrf.mxu0 }
 0x124   : > { %1745 = vmatpush.bf16.msrb.mxu1 %v2137_v44  ;;  %v1527_v54 = vadd.f32 %v1526_v53, %v480_v52  ;;  %v1539_v55 = vpop.f32.mrf.mxu1 }
 0x125   : > { %1758 = vmatpush.bf16.msrb.mxu2 %v2329_v45 }
 0x126   : > { %1771 = vmatpush.bf16.msrb.mxu3 %v2521_v47  ;;  %1733 = vmatmul.bf16.vlgmr.msrb.gmra.mxu0 %v3493_v30  ;;  %v1540_v56 = vadd.f32 %v1539_v55, %v1527_v54 }
 0x127   : > { %1746 = vmatmul.bf16.vlgmr.msrb.gmra.mxu1 %v3495_v31 }
 0x128   : > { %1759 = vmatmul.bf16.vlgmr.msrb.gmra.mxu2 %v3481_v15  ;;  %v481_v15 = vperm.slane %v3782_v0, 2 }
 0x129   : > { %1772 = vmatmul.bf16.vlgmr.msrb.gmra.mxu3 %v3483_v16 }
 0x12b   : > { %v1552_v57 = vpop.f32.mrf.mxu2  ;;  %v1528_v61 = vpop.f32.mrf.mxu0 }
 0x12c   : > { %v1553_v58 = vadd.f32 %v1552_v57, %v1540_v56  ;;  %v1565_v59 = vpop.f32.mrf.mxu3  ;;  %v1541_v62 = vpop.f32.mrf.mxu1 }
 0x12e   : > { %v1566_v60 = vadd.f32 %v1565_v59, %v1553_v58 }
 0x130   : > { %1778 = vst [vmem:[%s3809_s21 + $0x8] sm:$0xff] %v1566_v60 }
 0x133   : > { %v1554_v30 = vpop.f32.mrf.mxu2 }
 0x134   : > { %v1567_v31 = vpop.f32.mrf.mxu3 }
 0x143   : > { %v1578_v63 = vpop.f32.mrf.mxu0 }
 0x144   : > { %v1579_v16 = vadd.f32 %v1578_v63, %v481_v15  ;;  %v1591_v1 = vpop.f32.mrf.mxu1 }
 0x146   : > { %v1592_v2 = vadd.f32 %v1591_v1, %v1579_v16 }
 0x14b   : > { %v1604_v3 = vpop.f32.mrf.mxu2  ;;  %v1580_v7 = vpop.f32.mrf.mxu0 }
 0x14c   : > { %v1605_v4 = vadd.f32 %v1604_v3, %v1592_v2  ;;  %v1617_v5 = vpop.f32.mrf.mxu3  ;;  %v1593_v8 = vpop.f32.mrf.mxu1 }
 0x14e   : > { %v1618_v6 = vadd.f32 %v1617_v5, %v1605_v4 }
 0x150   : > { %1779 = vst [vmem:[%s3809_s21 + $0x10] sm:$0xff] %v1618_v6 }
 0x153   : > { %v1606_v9 = vpop.f32.mrf.mxu2 }
 0x154   : > { %v1619_v10 = vpop.f32.mrf.mxu3 }
 0x163   : > { %v1630_v12 = vpop.f32.mrf.mxu0 }
 0x164   : > { %v1631_v13 = vadd.f32 %v1630_v12, %v482_v11  ;;  %v1643_v14 = vpop.f32.mrf.mxu1 }
 0x166   : > { %v1644_v17 = vadd.f32 %v1643_v14, %v1631_v13 }
 0x16b   : > { %v1656_v18 = vpop.f32.mrf.mxu2  ;;  %v1632_v22 = vpop.f32.mrf.mxu0 }
 0x16c   : > { %v1657_v19 = vadd.f32 %v1656_v18, %v1644_v17  ;;  %v1669_v20 = vpop.f32.mrf.mxu3  ;;  %v1645_v23 = vpop.f32.mrf.mxu1 }
 0x16e   : > { %v1670_v21 = vadd.f32 %v1669_v20, %v1657_v19 }
 0x170   : > { %1780 = vst [vmem:[%s3809_s21 + $0x18] sm:$0xff] %v1670_v21 }
 0x173   : > { %v1658_v24 = vpop.f32.mrf.mxu2 }
 0x174   : > { %v1671_v25 = vpop.f32.mrf.mxu3 }
 0x183   : > { %v1682_v27 = vpop.f32.mrf.mxu0 }
 0x184   : > { %v1683_v28 = vadd.f32 %v1682_v27, %v483_v26  ;;  %v1695_v29 = vpop.f32.mrf.mxu1 }
 0x186   : > { %v1696_v32 = vadd.f32 %v1695_v29, %v1683_v28 }
 0x18b   : > { %v1708_v33 = vpop.f32.mrf.mxu2  ;;  %v1684_v37 = vpop.f32.mrf.mxu0 }
 0x18c   : > { %v1709_v34 = vadd.f32 %v1708_v33, %v1696_v32  ;;  %v1721_v35 = vpop.f32.mrf.mxu3  ;;  %v1697_v38 = vpop.f32.mrf.mxu1 }
 0x18e   : > { %v1722_v36 = vadd.f32 %v1721_v35, %v1709_v34 }
 0x190   : > { %1781 = vst [vmem:[%s3809_s21 + $0x20] sm:$0xff] %v1722_v36 }
 0x193   : > { %v1710_v39 = vpop.f32.mrf.mxu2 }
 0x194   : > { %v1723_v40 = vpop.f32.mrf.mxu3 }
 0x1a3   : > { %v1734_v42 = vpop.f32.mrf.mxu0 }
 0x1a4   : > { %v1735_v43 = vadd.f32 %v1734_v42, %v484_v41  ;;  %v1747_v44 = vpop.f32.mrf.mxu1 }
 0x1a6   : > { %v1748_v45 = vadd.f32 %v1747_v44, %v1735_v43 }
 0x1ab   : > { %v1760_v46 = vpop.f32.mrf.mxu2  ;;  %v1736_v49 = vpop.f32.mrf.mxu0 }
 0x1ac   : > { %v1761_v47 = vadd.f32 %v1760_v46, %v1748_v45  ;;  %v1773_v48 = vpop.f32.mrf.mxu3  ;;  %v1749_v50 = vpop.f32.mrf.mxu1 }
 0x1ae   : > { %v1774_v0 = vadd.f32 %v1773_v48, %v1761_v47 }
 0x1b0   : > { %1782 = vst [vmem:[%s3809_s21 + $0x28] sm:$0xff] %v1774_v0 }
 0x1b1   : > { %3093 = shalt.err (!%p3090_p1)
}
 0x1b2   : > { %2900 = dma.vmem_to_hbm [thread:$0]  (%p3313_p0), %s1798_s15, 768, %s1800_s6, %s1784_s5  }
 0x1b3   : > { %v1762_v51 = vpop.f32.mrf.mxu2 }
 0x1b4   : > { %v1775_v52 = vpop.f32.mrf.mxu3 }
 0x1b5 PF: > { %s3899_s14 = sld [smem:[#allocation13_spill]]  ;;  %p2917_p11 = scmp.ge.s32.totalorder %s3160_s18, 2 }
 0x1b6   : > { %s3900_s29 = sld [smem:[#allocation18_spill]] }
 0x1bb   : > { %s1811_s9 = sand.u32 1, %s3899_s14  }
 0x1bc   : > { %p3901_p2 = scmp.ne.s32.totalorder %s3900_s29, 0  ;;  %s1812_s4 = scalar_lea.sflag [#allocation4], %s1811_s9 }
 0x1be   : > { %p2913_p5 = pnand %p2917_p11, %p3901_p2 }
 0x1c0   : > { %p2914_p6 = pneg %p2913_p5 }
 0x1c2   : > { %3131 = dma.done.wait (%p2914_p6), %s1812_s4, 768  }
 0x1c3   : > { %3133 = vsyncadd (%p2914_p6), %s1812_s4, 4294966528  ;;  %s3902_s18 = sld [smem:[#allocation15_spill]]  ;;  %s3907_s12 = smov %s3140_s13 }
 0x1c4   : > { %s3903_s30 = sld [smem:[#allocation12_spill]]  ;;  %s3909_s15 = smov %s3152_s16 }
 0x1c5   : > { %s3904_s14 = sld [smem:[#allocation16_spill]] }
 0x1c6   : > { %s3905_s27 = sld [smem:[#allocation14_spill]] }
 0x1c7   : > { %s3906_s17 = sld [smem:[#allocation17_spill]] }
 0x1c9   : > { %p19_p0 = scmp.ge.s32.totalorder %s3902_s18, 5  }
 0x1ca   : > { %s3908_s13 = smov %s3903_s30 }
 0x1cb   :  { %21 = sbr.rel (!%p19_p0) target bundleno = 11 (0xb), region = 101 }
 0x1cc   : > { %s3910_s16 = smov %s3905_s27 }
 0x1d0   :  { %1818 = vsyncpa [#allocation3], 1 }
 0x1d1   :  { %1820 = vsyncpa [#allocation3 + $0x1], 1 }
 0x1d2   :  { %1821 = vsyncpa [#allocation6], 1 }
 0x1d3   :  { %1823 = vsyncpa [#allocation6 + $0x1], 1 }
 0x1d4   :  { %1824 = vsyncpa [#allocation4], 1 }
 0x1d5   :  { %1826 = vsyncpa [#allocation4 + $0x1], 1 }

</bundles_post_ra>
